<compile_context>
chip_gen: v6e
topology: v6e:2x2x1
jax: 0.10.0
libtpu: 0.0.40
codegen_flags: <defaults>
</compile_context>

<pallas_src>
import functools
import math

import jax
import jax.numpy as jnp
from jax import lax
from jax.experimental import pallas as pl
from jax.experimental.pallas import tpu as pltpu

# ---- synthetic stand-ins for the external `Const` class -------------------
N_PRIMARY_DISEASE = 3   # len(Const.primary_disease_states)
N_NODAL_DISEASE = 4     # len(Const.nodal_disease_states)
N_MODIFICATIONS = 3     # len(Const.modifications)   (state == 1)
N_DLT = 6               # len(Const.dlt1)
N_OUT = N_PRIMARY_DISEASE + N_NODAL_DISEASE + N_MODIFICATIONS + N_DLT  # 16

EPS = 0.01              # SimulatorBase eps
LN_EPS = 1e-5           # torch.nn.LayerNorm default eps


# --------------------------------------------------------------------------
# Kernel 1: normalization (pre-folded) + resize layer + fused K/V projection.
# Emits ONLY K and V (bf16) — h and q never round-trip through HBM.
# --------------------------------------------------------------------------
def kv_proj_kernel(x_ref, wr_ref, br_ref, wkv_ref, bkv_ref, k_out, v_out):
    # input normalization (x + eps) / (1 + eps) is folded into wr/br upstream
    h = jnp.maximum(
        jnp.dot(x_ref[...], wr_ref[...], preferred_element_type=jnp.float32)
        + br_ref[...], 0.0)
    kv = (jnp.dot(h, wkv_ref[...], preferred_element_type=jnp.float32)
          + bkv_ref[...])                                   # (TN, 2E) fused K|V
    embed = k_out.shape[-1]
    k_out[...] = kv[:, :embed].astype(k_out.dtype)          # bf16 HBM K
    v_out[...] = kv[:, embed:].astype(v_out.dtype)          # bf16 HBM V


# --------------------------------------------------------------------------
# Kernel 2: recompute h/q for the query tile, resident-K/V attention,
# residual + LayerNorm + MLP + fused output heads, single lane-dense store.
# --------------------------------------------------------------------------
def attn_kernel(num_heads, x_ref, wr_ref, br_ref, wq_ref, bq_ref,
                k_ref, v_ref, wo_ref, bo_ref, g_ref, bln_ref,
                wl_ref, bl_ref, wh_ref, bh_ref, out_ref, ocat_ref):
    # ---- recompute h and q for this row tile (few-% of one MXU push; saves a
    # full write+read of h and of the q third of qkv through HBM).
    h = jnp.maximum(
        jnp.dot(x_ref[...], wr_ref[...], preferred_element_type=jnp.float32)
        + br_ref[...], 0.0)                                  # (TN, E) residual
    q = (jnp.dot(h, wq_ref[...], preferred_element_type=jnp.float32)
         + bq_ref[...])                        # 1/sqrt(head_dim) folded into wq
    embed = h.shape[-1]
    hd = embed // num_heads
    q_b = q.astype(k_ref.dtype)                # bf16 MXU operands, f32 accumulate

    # ---- multi-head attention over the resident (single-buffered) K/V.
    # Static head unroll (small N); per-head output is placed at its static
    # lane offset in `ocat_ref` so the out-projection is ONE K=E MXU push.
    # TODO(synk): kv-tiled online-softmax path for very large N (see header).
    for hi in range(num_heads):
        sl = slice(hi * hd, (hi + 1) * hd)
        kh = k_ref[:, sl]                                     # (NK, hd) bf16
        vh = v_ref[:, sl]                                     # (NK, hd) bf16
        s = lax.dot_general(q_b[:, sl], kh, (((1,), (1,)), ((), ())),
                            preferred_element_type=jnp.float32)  # (TN, NK) f32
        m = jnp.max(s, axis=-1, keepdims=True)
        p = jnp.exp(s - m)
        p = p / jnp.sum(p, axis=-1, keepdims=True)            # exact divide
        ocat_ref[:, sl] = jnp.dot(p.astype(vh.dtype), vh,
                                  preferred_element_type=jnp.float32)
    attn = (jnp.dot(ocat_ref[...], wo_ref[...],
                    preferred_element_type=jnp.float32) + bo_ref[...])

    # ---- residual + LayerNorm + ReLU (f32 throughout)
    y = attn + h
    mu = jnp.mean(y, axis=-1, keepdims=True)
    var = jnp.mean((y - mu) ** 2, axis=-1, keepdims=True)
    y = (y - mu) * lax.rsqrt(var + LN_EPS) * g_ref[...] + bln_ref[...]
    y = jnp.maximum(y, 0.0)

    # ---- hidden layer + ReLU (dropout = identity at inference)
    z = jnp.maximum(
        jnp.dot(y, wl_ref[...], preferred_element_type=jnp.float32)
        + bl_ref[...], 0.0)

    # ---- four output heads fused into ONE (hidden, 16) matmul; grouped
    # log-softmax / sigmoid done with lane masks so the (TN, 16) result is
    # assembled in registers and written with a single store.
    logits = (jnp.dot(z, wh_ref[...], preferred_element_type=jnp.float32)
              + bh_ref[...])
    o0 = N_PRIMARY_DISEASE
    o1 = o0 + N_NODAL_DISEASE
    o2 = o1 + N_MODIFICATIONS
    lane = lax.broadcasted_iota(jnp.int32, logits.shape, dimension=1)
    out = jax.nn.sigmoid(logits)                              # DLT lanes [o2,16)
    for lo, up in ((0, o0), (o0, o1), (o1, o2)):              # log-softmax groups
        in_seg = (lane >= lo) & (lane < up)
        gmax = jnp.max(jnp.where(in_seg, logits, jnp.float32(-1e30)),
                       axis=-1, keepdims=True)
        e = jnp.where(in_seg, jnp.exp(jnp.minimum(logits - gmax, 0.0)), 0.0)
        lse = gmax + jnp.log(jnp.sum(e, axis=-1, keepdims=True))
        out = jnp.where(in_seg, logits - lse, out)
    out_ref[...] = out


# --------------------------------------------------------------------------
# Wrapper helpers
# --------------------------------------------------------------------------
def _row_tile(n, max_tile, align):
    """Largest power-of-two tile <= max_tile that divides n, is a multiple of
    `align` (sublane tiling for the tile's dtype) and leaves >= 2 grid steps so
    the "parallel" axis can shard across v7x's two TensorCores."""
    t = max_tile
    while t >= align:
        if t <= n // 2 and n % t == 0:
            return t
        t //= 2
    return n   # single full block (block dim == full array dim is allowed)


def _vmem_limit_bytes():
    """Per-generation scoped-VMEM limit: ~75% of physical per-core VMEM
    (v5e/v6e: 128 MiB -> 96 MiB, v7x: 64 MiB -> 48 MiB)."""
    try:
        cap = int(pltpu.get_tpu_info().vmem_capacity_bytes)
        return max(32 * 1024 * 1024, (cap * 3) // 4)
    except Exception:
        return None   # fall back to the compiler's default scoped limit


def _single_buffered(shape):
    """Grid-invariant (constant index_map) input: request a single pipeline
    buffer so the full-N K/V tiles are not double-buffered (halves their VMEM
    residency; matters most under v7x's 64 MiB VMEM)."""
    idx = lambda i: (0,) * len(shape)
    try:
        return pl.BlockSpec(shape, idx, pipeline_mode=pl.Buffered(1))
    except Exception:   # older jax without pipeline_mode: default buffering
        return pl.BlockSpec(shape, idx)


def prepare_params(p, num_heads):
    """Static weight folding/fusion (do once per checkpoint, not per call)."""
    embed = p["wq"].shape[0]
    hd = embed // num_heads
    scale = 1.0 / math.sqrt(hd)

    # fold input normalization (x - mean + eps) / (std + eps) [mean=0, std=1]
    wr = p["wr"] / (1.0 + EPS)
    br = p["br"] + (EPS / (1.0 + EPS)) * jnp.sum(p["wr"], axis=0, keepdims=True)

    # fold the attention 1/sqrt(head_dim) scale into the q projection
    wq = p["wq"] * scale
    bq = p["bq"] * scale

    # fuse k/v into a single (E, 2E) projection (q is recomputed per query
    # tile inside kernel 2, so it never round-trips through HBM)
    wkv = jnp.concatenate([p["wk"], p["wv"]], axis=1)
    bkv = jnp.concatenate([p["bk"], p["bv"]], axis=1)

    # fuse the four tiny output heads into one (hidden, 16) matmul
    wh = jnp.concatenate([p["wpd"], p["wnd"], p["wmod"], p["wdlt"]], axis=1)
    bh = jnp.concatenate([p["bpd"], p["bnd"], p["bmod"], p["bdlt"]], axis=1)

    return dict(wr=wr, br=br, wq=wq, bq=bq, wkv=wkv, bkv=bkv,
                wo=p["wo"], bo=p["bo"], ln_g=p["ln_g"], ln_b=p["ln_b"],
                wl=p["wl"], bl=p["bl"], wh=wh, bh=bh)


@functools.partial(jax.jit, static_argnums=(2,))
def outcome_attention_forward(x, prep, num_heads):
    n, d_in = x.shape
    embed = prep["wq"].shape[0]
    hidden = prep["wl"].shape[1]
    two_e = prep["wkv"].shape[1]
    cparams = pltpu.CompilerParams(dimension_semantics=("parallel",),
                                   vmem_limit_bytes=_vmem_limit_bytes())

    # ---- kernel 1: streaming K/V projection; large row tile (tiny per-step
    # VMEM), bf16 outputs written directly in their final (N, E) layout.
    tn1 = _row_tile(n, 2048, 16)   # bf16 outputs want sublane multiples of 16
    k, v = pl.pallas_call(
        kv_proj_kernel,
        out_shape=(jax.ShapeDtypeStruct((n, embed), jnp.bfloat16),
                   jax.ShapeDtypeStruct((n, embed), jnp.bfloat16)),
        grid=(n // tn1,),
        in_specs=[
            pl.BlockSpec((tn1, d_in), lambda i: (i, 0)),
            pl.BlockSpec((d_in, embed), lambda i: (0, 0)),
            pl.BlockSpec((1, embed), lambda i: (0, 0)),
            pl.BlockSpec((embed, two_e), lambda i: (0, 0)),
            pl.BlockSpec((1, two_e), lambda i: (0, 0)),
        ],
        out_specs=(pl.BlockSpec((tn1, embed), lambda i: (i, 0)),
                   pl.BlockSpec((tn1, embed), lambda i: (i, 0))),
        compiler_params=cparams,
    )(x, prep["wr"], prep["br"], prep["wkv"], prep["bkv"])

    # ---- kernel 2: attention + LN + MLP + fused heads, tiled over queries ---
    tn2 = _row_tile(n, 512, 8)     # sized by the (tn2, N) score tile
    out16 = pl.pallas_call(
        functools.partial(attn_kernel, num_heads),
        out_shape=jax.ShapeDtypeStruct((n, N_OUT), jnp.float32),
        grid=(n // tn2,),
        in_specs=[
            pl.BlockSpec((tn2, d_in), lambda i: (i, 0)),      # x row tile
            pl.BlockSpec((d_in, embed), lambda i: (0, 0)),    # wr (norm folded)
            pl.BlockSpec((1, embed), lambda i: (0, 0)),       # br
            pl.BlockSpec((embed, embed), lambda i: (0, 0)),   # wq (scale folded)
            pl.BlockSpec((1, embed), lambda i: (0, 0)),       # bq
            _single_buffered((n, embed)),                     # K (grid-invariant)
            _single_buffered((n, embed)),                     # V (grid-invariant)
            pl.BlockSpec((embed, embed), lambda i: (0, 0)),   # wo
            pl.BlockSpec((1, embed), lambda i: (0, 0)),       # bo
            pl.BlockSpec((1, embed), lambda i: (0, 0)),       # ln gamma
            pl.BlockSpec((1, embed), lambda i: (0, 0)),       # ln beta
            pl.BlockSpec((embed, hidden), lambda i: (0, 0)),  # wl
            pl.BlockSpec((1, hidden), lambda i: (0, 0)),      # bl
            pl.BlockSpec((hidden, N_OUT), lambda i: (0, 0)),  # fused heads W
            pl.BlockSpec((1, N_OUT), lambda i: (0, 0)),       # fused heads b
        ],
        out_specs=pl.BlockSpec((tn2, N_OUT), lambda i: (i, 0)),
        scratch_shapes=[pltpu.VMEM((tn2, embed), jnp.float32)],  # head-out slab
        compiler_params=cparams,
    )(x, prep["wr"], prep["br"], prep["wq"], prep["bq"], k, v,
      prep["wo"], prep["bo"], prep["ln_g"], prep["ln_b"],
      prep["wl"], prep["bl"], prep["wh"], prep["bh"])

    # split the single lane-dense slab back into the module's 4 outputs
    o0 = N_PRIMARY_DISEASE
    o1 = o0 + N_NODAL_DISEASE
    o2 = o1 + N_MODIFICATIONS
    return (out16[:, :o0], out16[:, o0:o1], out16[:, o1:o2], out16[:, o2:])


# ---------------- pure-JAX reference (original, unfused math) --------------
def reference_forward(x, p, num_heads):
    x = (x + EPS) / (1.0 + EPS)
    h = jnp.maximum(x @ p["wr"] + p["br"], 0.0)
    q = h @ p["wq"] + p["bq"]
    k = h @ p["wk"] + p["bk"]
    v = h @ p["wv"] + p["bv"]
    embed = q.shape[-1]
    hd = embed // num_heads
    outs = []
    for hi in range(num_heads):
        sl = slice(hi * hd, (hi + 1) * hd)
        s = (q[:, sl] / jnp.sqrt(jnp.float32(hd))) @ k[:, sl].T
        outs.append(jax.nn.softmax(s, axis=-1) @ v[:, sl])
    attn = jnp.concatenate(outs, axis=-1) @ p["wo"] + p["bo"]
    y = attn + h
    mu = y.mean(-1, keepdims=True)
    var = ((y - mu) ** 2).mean(-1, keepdims=True)
    y = (y - mu) / jnp.sqrt(var + LN_EPS) * p["ln_g"] + p["ln_b"]
    y = jnp.maximum(y, 0.0)
    z = jnp.maximum(y @ p["wl"] + p["bl"], 0.0)
    pd = jax.nn.log_softmax(z @ p["wpd"] + p["bpd"], axis=1)
    nd = jax.nn.log_softmax(z @ p["wnd"] + p["bnd"], axis=1)
    mod = jax.nn.log_softmax(z @ p["wmod"] + p["bmod"], axis=1)
    dlt = jax.nn.sigmoid(z @ p["wdlt"] + p["bdlt"])
    return pd, nd, mod, dlt


def init_params(key, input_size, embed_size, hidden, n_heads):
    ks = jax.random.split(key, 32)
    ki = iter(range(32))

    def lin(kin, kout, fan_in):
        bound = 1.0 / jnp.sqrt(jnp.float32(fan_in))
        w = jax.random.uniform(ks[next(ki)], (kin, kout), jnp.float32, -bound, bound)
        b = jax.random.uniform(ks[next(ki)], (1, kout), jnp.float32, -bound, bound)
        return w, b

    p = {}
    p["wr"], p["br"] = lin(input_size, embed_size, input_size)
    p["wq"], p["bq"] = lin(embed_size, embed_size, embed_size)
    p["wk"], p["bk"] = lin(embed_size, embed_size, embed_size)
    p["wv"], p["bv"] = lin(embed_size, embed_size, embed_size)
    p["wo"], p["bo"] = lin(embed_size, embed_size, embed_size)
    p["ln_g"] = jnp.ones((1, embed_size), jnp.float32)
    p["ln_b"] = jnp.zeros((1, embed_size), jnp.float32)
    p["wl"], p["bl"] = lin(embed_size, hidden, embed_size)
    p["wpd"], p["bpd"] = lin(hidden, N_PRIMARY_DISEASE, hidden)
    p["wnd"], p["bnd"] = lin(hidden, N_NODAL_DISEASE, hidden)
    p["wmod"], p["bmod"] = lin(hidden, N_MODIFICATIONS, hidden)
    p["wdlt"], p["bdlt"] = lin(hidden, N_DLT, hidden)   # stacked Linear(hidden,1) heads
    return p


if __name__ == "__main__":
    # Small shapes consistent with the module's forward pass (N rows of the
    # feature sequence attend over each other); N=32 so both kernels get a
    # >= 2-step "parallel" grid (dual-TC on v7x).
    N, INPUT_SIZE, EMBED, HIDDEN, NUM_HEADS = 32, 16, 32, 64, 4

    key = jax.random.PRNGKey(0)
    kx, kp = jax.random.split(key)
    x = jax.random.normal(kx, (N, INPUT_SIZE), jnp.float32)
    params = init_params(kp, INPUT_SIZE, EMBED, HIDDEN, NUM_HEADS)
    prep = prepare_params(params, NUM_HEADS)

    outs = outcome_attention_forward(x, prep, NUM_HEADS)
    outs = jax.block_until_ready(outs)

    refs = reference_forward(x, params, NUM_HEADS)
    # tolerance accounts for the bf16 K/V + bf16 attention-matmul operands
    for o, r in zip(outs, refs):
        assert o.shape == r.shape and o.dtype == jnp.float32
        assert jnp.allclose(o, r, rtol=1e-2, atol=1e-2), "mismatch vs reference"

    print("KERNEL_OK")
</pallas_src>

<mosaic_0001>
module attributes {stable_mosaic.version = 11 : i64} {
  func.func @kv_proj_kernel(%arg0: i32, %arg1: memref<16x16xf32, #tpu.memory_space<vmem>>, %arg2: memref<16x32xf32, #tpu.memory_space<vmem>>, %arg3: memref<1x32xf32, #tpu.memory_space<vmem>>, %arg4: memref<32x64xf32, #tpu.memory_space<vmem>>, %arg5: memref<1x64xf32, #tpu.memory_space<vmem>>, %arg6: memref<16x32xbf16, #tpu.memory_space<vmem>>, %arg7: memref<16x32xbf16, #tpu.memory_space<vmem>>) attributes {dimension_semantics = [#tpu.dimension_semantics<parallel>], iteration_bounds = array<i64: 2>, scalar_prefetch = 0 : i64, scratch_operands = 0 : i64, tpu.core_type = #tpu.core_type<tc>, window_params = [{transform_indices = @transform_0, window_bounds = array<i64: 16, 16>}, {pipeline_mode = #tpu.pipeline_mode<synchronous>, transform_indices = @transform_1, window_bounds = array<i64: 16, 32>}, {pipeline_mode = #tpu.pipeline_mode<synchronous>, transform_indices = @transform_2, window_bounds = array<i64: 1, 32>}, {pipeline_mode = #tpu.pipeline_mode<synchronous>, transform_indices = @transform_3, window_bounds = array<i64: 32, 64>}, {pipeline_mode = #tpu.pipeline_mode<synchronous>, transform_indices = @transform_4, window_bounds = array<i64: 1, 64>}, {transform_indices = @transform_5, window_bounds = array<i64: 16, 32>}, {transform_indices = @transform_6, window_bounds = array<i64: 16, 32>}]} {
    %c0 = arith.constant 0 : index
    %c0_0 = arith.constant 0 : index
    %0 = vector.load %arg1[%c0, %c0_0] : memref<16x16xf32, #tpu.memory_space<vmem>>, vector<16x16xf32>
    %c0_1 = arith.constant 0 : index
    %c0_2 = arith.constant 0 : index
    %1 = vector.load %arg2[%c0_1, %c0_2] : memref<16x32xf32, #tpu.memory_space<vmem>>, vector<16x32xf32>
    %cst = arith.constant dense<0.000000e+00> : vector<16x32xf32>
    %2 = tpu.matmul %0, %1, %cst {dimension_numbers = #tpu.dot_dimension_numbers<[1], [0], [0], [1], [0, 0, 1, 1], [], []>} : vector<16x16xf32>, vector<16x32xf32>, vector<16x32xf32> -> vector<16x32xf32>
    %c0_3 = arith.constant 0 : index
    %c0_4 = arith.constant 0 : index
    %3 = vector.load %arg3[%c0_3, %c0_4] : memref<1x32xf32, #tpu.memory_space<vmem>>, vector<1x32xf32>
    %4 = vector.broadcast %3 : vector<1x32xf32> to vector<16x32xf32>
    %5 = arith.addf %2, %4 : vector<16x32xf32>
    %cst_5 = arith.constant 0.000000e+00 : f32
    %6 = vector.broadcast %cst_5 : f32 to vector<16x32xf32>
    %7 = arith.maximumf %5, %6 : vector<16x32xf32>
    %c0_6 = arith.constant 0 : index
    %c0_7 = arith.constant 0 : index
    %8 = vector.load %arg4[%c0_6, %c0_7] : memref<32x64xf32, #tpu.memory_space<vmem>>, vector<32x64xf32>
    %cst_8 = arith.constant dense<0.000000e+00> : vector<16x64xf32>
    %9 = tpu.matmul %7, %8, %cst_8 {dimension_numbers = #tpu.dot_dimension_numbers<[1], [0], [0], [1], [0, 0, 1, 1], [], []>} : vector<16x32xf32>, vector<32x64xf32>, vector<16x64xf32> -> vector<16x64xf32>
    %c0_9 = arith.constant 0 : index
    %c0_10 = arith.constant 0 : index
    %10 = vector.load %arg5[%c0_9, %c0_10] : memref<1x64xf32, #tpu.memory_space<vmem>>, vector<1x64xf32>
    %11 = vector.broadcast %10 : vector<1x64xf32> to vector<16x64xf32>
    %12 = arith.addf %9, %11 : vector<16x64xf32>
    %13 = vector.extract_strided_slice %12 {offsets = [0, 0], sizes = [16, 32], strides = [1, 1]} : vector<16x64xf32> to vector<16x32xf32>
    %14 = arith.truncf %13 : vector<16x32xf32> to vector<16x32xbf16>
    %c0_11 = arith.constant 0 : index
    %c0_12 = arith.constant 0 : index
    %15 = vector.load %arg6[%c0_11, %c0_12] : memref<16x32xbf16, #tpu.memory_space<vmem>>, vector<16x32xbf16>
    tpu.vector_store %arg6[%c0_11, %c0_12], %14 {strides = array<i32>} : memref<16x32xbf16, #tpu.memory_space<vmem>>, vector<16x32xbf16>,
    %16 = vector.extract_strided_slice %12 {offsets = [0, 32], sizes = [16, 32], strides = [1, 1]} : vector<16x64xf32> to vector<16x32xf32>
    %17 = arith.truncf %16 : vector<16x32xf32> to vector<16x32xbf16>
    %c0_13 = arith.constant 0 : index
    %c0_14 = arith.constant 0 : index
    %18 = vector.load %arg7[%c0_13, %c0_14] : memref<16x32xbf16, #tpu.memory_space<vmem>>, vector<16x32xbf16>
    tpu.vector_store %arg7[%c0_13, %c0_14], %17 {strides = array<i32>} : memref<16x32xbf16, #tpu.memory_space<vmem>>, vector<16x32xbf16>,
    return
  }
  func.func @transform_0(%arg0: i32) -> (i32, i32) {
    %c0_i32 = arith.constant 0 : i32
    %c0_i32_0 = arith.constant 0 : i32
    return %arg0, %c0_i32 : i32, i32
  }
  func.func @transform_1(%arg0: i32) -> (i32, i32) {
    %c0_i32 = arith.constant 0 : i32
    %c0_i32_0 = arith.constant 0 : i32
    %c0_i32_1 = arith.constant 0 : i32
    return %c0_i32, %c0_i32_0 : i32, i32
  }
  func.func @transform_2(%arg0: i32) -> (i32, i32) {
    %c0_i32 = arith.constant 0 : i32
    %c0_i32_0 = arith.constant 0 : i32
    %c0_i32_1 = arith.constant 0 : i32
    return %c0_i32, %c0_i32_0 : i32, i32
  }
  func.func @transform_3(%arg0: i32) -> (i32, i32) {
    %c0_i32 = arith.constant 0 : i32
    %c0_i32_0 = arith.constant 0 : i32
    %c0_i32_1 = arith.constant 0 : i32
    return %c0_i32, %c0_i32_0 : i32, i32
  }
  func.func @transform_4(%arg0: i32) -> (i32, i32) {
    %c0_i32 = arith.constant 0 : i32
    %c0_i32_0 = arith.constant 0 : i32
    %c0_i32_1 = arith.constant 0 : i32
    return %c0_i32, %c0_i32_0 : i32, i32
  }
  func.func @transform_5(%arg0: i32) -> (i32, i32) {
    %c0_i32 = arith.constant 0 : i32
    %c0_i32_0 = arith.constant 0 : i32
    return %arg0, %c0_i32 : i32, i32
  }
  func.func @transform_6(%arg0: i32) -> (i32, i32) {
    %c0_i32 = arith.constant 0 : i32
    %c0_i32_0 = arith.constant 0 : i32
    return %arg0, %c0_i32 : i32, i32
  }
}

module attributes {stable_mosaic.version = 11 : i64} {
  func.func @attn_kernel(%arg0: i32, %arg1: memref<16x16xf32, #tpu.memory_space<vmem>>, %arg2: memref<16x32xf32, #tpu.memory_space<vmem>>, %arg3: memref<1x32xf32, #tpu.memory_space<vmem>>, %arg4: memref<32x32xf32, #tpu.memory_space<vmem>>, %arg5: memref<1x32xf32, #tpu.memory_space<vmem>>, %arg6: memref<32x32xbf16, #tpu.memory_space<vmem>>, %arg7: memref<32x32xbf16, #tpu.memory_space<vmem>>, %arg8: memref<32x32xf32, #tpu.memory_space<vmem>>, %arg9: memref<1x32xf32, #tpu.memory_space<vmem>>, %arg10: memref<1x32xf32, #tpu.memory_space<vmem>>, %arg11: memref<1x32xf32, #tpu.memory_space<vmem>>, %arg12: memref<32x64xf32, #tpu.memory_space<vmem>>, %arg13: memref<1x64xf32, #tpu.memory_space<vmem>>, %arg14: memref<64x16xf32, #tpu.memory_space<vmem>>, %arg15: memref<1x16xf32, #tpu.memory_space<vmem>>, %arg16: memref<16x16xf32, #tpu.memory_space<vmem>>, %arg17: memref<16x32xf32, #tpu.memory_space<vmem>>) attributes {dimension_semantics = [#tpu.dimension_semantics<parallel>], iteration_bounds = array<i64: 2>, scalar_prefetch = 0 : i64, scratch_operands = 1 : i64, tpu.core_type = #tpu.core_type<tc>, window_params = [{transform_indices = @transform_0, window_bounds = array<i64: 16, 16>}, {pipeline_mode = #tpu.pipeline_mode<synchronous>, transform_indices = @transform_1, window_bounds = array<i64: 16, 32>}, {pipeline_mode = #tpu.pipeline_mode<synchronous>, transform_indices = @transform_2, window_bounds = array<i64: 1, 32>}, {pipeline_mode = #tpu.pipeline_mode<synchronous>, transform_indices = @transform_3, window_bounds = array<i64: 32, 32>}, {pipeline_mode = #tpu.pipeline_mode<synchronous>, transform_indices = @transform_4, window_bounds = array<i64: 1, 32>}, {pipeline_mode = #tpu.pipeline_mode<synchronous>, transform_indices = @transform_5, window_bounds = array<i64: 32, 32>}, {pipeline_mode = #tpu.pipeline_mode<synchronous>, transform_indices = @transform_6, window_bounds = array<i64: 32, 32>}, {pipeline_mode = #tpu.pipeline_mode<synchronous>, transform_indices = @transform_7, window_bounds = array<i64: 32, 32>}, {pipeline_mode = #tpu.pipeline_mode<synchronous>, transform_indices = @transform_8, window_bounds = array<i64: 1, 32>}, {pipeline_mode = #tpu.pipeline_mode<synchronous>, transform_indices = @transform_9, window_bounds = array<i64: 1, 32>}, {pipeline_mode = #tpu.pipeline_mode<synchronous>, transform_indices = @transform_10, window_bounds = array<i64: 1, 32>}, {pipeline_mode = #tpu.pipeline_mode<synchronous>, transform_indices = @transform_11, window_bounds = array<i64: 32, 64>}, {pipeline_mode = #tpu.pipeline_mode<synchronous>, transform_indices = @transform_12, window_bounds = array<i64: 1, 64>}, {pipeline_mode = #tpu.pipeline_mode<synchronous>, transform_indices = @transform_13, window_bounds = array<i64: 64, 16>}, {pipeline_mode = #tpu.pipeline_mode<synchronous>, transform_indices = @transform_14, window_bounds = array<i64: 1, 16>}, {transform_indices = @transform_15, window_bounds = array<i64: 16, 16>}]} {
    %c0 = arith.constant 0 : index
    %c0_0 = arith.constant 0 : index
    %0 = vector.load %arg1[%c0, %c0_0] : memref<16x16xf32, #tpu.memory_space<vmem>>, vector<16x16xf32>
    %c0_1 = arith.constant 0 : index
    %c0_2 = arith.constant 0 : index
    %1 = vector.load %arg2[%c0_1, %c0_2] : memref<16x32xf32, #tpu.memory_space<vmem>>, vector<16x32xf32>
    %cst = arith.constant dense<0.000000e+00> : vector<16x32xf32>
    %2 = tpu.matmul %0, %1, %cst {dimension_numbers = #tpu.dot_dimension_numbers<[1], [0], [0], [1], [0, 0, 1, 1], [], []>} : vector<16x16xf32>, vector<16x32xf32>, vector<16x32xf32> -> vector<16x32xf32>
    %c0_3 = arith.constant 0 : index
    %c0_4 = arith.constant 0 : index
    %3 = vector.load %arg3[%c0_3, %c0_4] : memref<1x32xf32, #tpu.memory_space<vmem>>, vector<1x32xf32>
    %4 = vector.broadcast %3 : vector<1x32xf32> to vector<16x32xf32>
    %5 = arith.addf %2, %4 : vector<16x32xf32>
    %cst_5 = arith.constant 0.000000e+00 : f32
    %6 = vector.broadcast %cst_5 : f32 to vector<16x32xf32>
    %7 = arith.maximumf %5, %6 : vector<16x32xf32>
    %c0_6 = arith.constant 0 : index
    %c0_7 = arith.constant 0 : index
    %8 = vector.load %arg4[%c0_6, %c0_7] : memref<32x32xf32, #tpu.memory_space<vmem>>, vector<32x32xf32>
    %cst_8 = arith.constant dense<0.000000e+00> : vector<16x32xf32>
    %9 = tpu.matmul %7, %8, %cst_8 {dimension_numbers = #tpu.dot_dimension_numbers<[1], [0], [0], [1], [0, 0, 1, 1], [], []>} : vector<16x32xf32>, vector<32x32xf32>, vector<16x32xf32> -> vector<16x32xf32>
    %c0_9 = arith.constant 0 : index
    %c0_10 = arith.constant 0 : index
    %10 = vector.load %arg5[%c0_9, %c0_10] : memref<1x32xf32, #tpu.memory_space<vmem>>, vector<1x32xf32>
    %11 = vector.broadcast %10 : vector<1x32xf32> to vector<16x32xf32>
    %12 = arith.addf %9, %11 : vector<16x32xf32>
    %13 = arith.truncf %12 : vector<16x32xf32> to vector<16x32xbf16>
    %c0_11 = arith.constant 0 : index
    %c0_12 = arith.constant 0 : index
    %14 = vector.load %arg6[%c0_11, %c0_12] : memref<32x32xbf16, #tpu.memory_space<vmem>>, vector<32x8xbf16>
    %c0_13 = arith.constant 0 : index
    %c0_14 = arith.constant 0 : index
    %15 = vector.load %arg7[%c0_13, %c0_14] : memref<32x32xbf16, #tpu.memory_space<vmem>>, vector<32x8xbf16>
    %16 = vector.extract_strided_slice %13 {offsets = [0, 0], sizes = [16, 8], strides = [1, 1]} : vector<16x32xbf16> to vector<16x8xbf16>
    %cst_15 = arith.constant dense<0.000000e+00> : vector<16x32xf32>
    %17 = tpu.matmul %16, %14, %cst_15 {dimension_numbers = #tpu.dot_dimension_numbers<[1], [1], [0], [0], [0, 0, 1, 0], [], []>} : vector<16x8xbf16>, vector<32x8xbf16>, vector<16x32xf32> -> vector<16x32xf32>
    %cst_16 = arith.constant dense<0xFF800000> : vector<16xf32>
    %18 = vector.multi_reduction <maximumf>, %17, %cst_16 [1] : vector<16x32xf32> to vector<16xf32>
    %19 = vector.shape_cast %18 : vector<16xf32> to vector<16x1xf32>
    %20 = vector.broadcast %19 : vector<16x1xf32> to vector<16x32xf32>
    %21 = arith.subf %17, %20 : vector<16x32xf32>
    %22 = math.exp %21 : vector<16x32xf32>
    %cst_17 = arith.constant dense<0.000000e+00> : vector<16xf32>
    %23 = vector.multi_reduction <add>, %22, %cst_17 [1] : vector<16x32xf32> to vector<16xf32>
    %24 = vector.shape_cast %23 : vector<16xf32> to vector<16x1xf32>
    %25 = vector.broadcast %24 : vector<16x1xf32> to vector<16x32xf32>
    %26 = arith.divf %22, %25 : vector<16x32xf32>
    %27 = arith.truncf %26 : vector<16x32xf32> to vector<16x32xbf16>
    %cst_18 = arith.constant dense<0.000000e+00> : vector<16x8xf32>
    %28 = tpu.matmul %27, %15, %cst_18 {dimension_numbers = #tpu.dot_dimension_numbers<[1], [0], [0], [1], [0, 0, 1, 1], [], []>} : vector<16x32xbf16>, vector<32x8xbf16>, vector<16x8xf32> -> vector<16x8xf32>
    %c0_19 = arith.constant 0 : index
    %c0_20 = arith.constant 0 : index
    %29 = vector.load %arg17[%c0_19, %c0_20] : memref<16x32xf32, #tpu.memory_space<vmem>>, vector<16x8xf32>
    tpu.vector_store %arg17[%c0_19, %c0_20], %28 {strides = array<i32>} : memref<16x32xf32, #tpu.memory_space<vmem>>, vector<16x8xf32>,
    %c0_21 = arith.constant 0 : index
    %c8 = arith.constant 8 : index
    %30 = vector.load %arg6[%c0_21, %c8] : memref<32x32xbf16, #tpu.memory_space<vmem>>, vector<32x8xbf16>
    %c0_22 = arith.constant 0 : index
    %c8_23 = arith.constant 8 : index
    %31 = vector.load %arg7[%c0_22, %c8_23] : memref<32x32xbf16, #tpu.memory_space<vmem>>, vector<32x8xbf16>
    %32 = vector.extract_strided_slice %13 {offsets = [0, 8], sizes = [16, 8], strides = [1, 1]} : vector<16x32xbf16> to vector<16x8xbf16>
    %cst_24 = arith.constant dense<0.000000e+00> : vector<16x32xf32>
    %33 = tpu.matmul %32, %30, %cst_24 {dimension_numbers = #tpu.dot_dimension_numbers<[1], [1], [0], [0], [0, 0, 1, 0], [], []>} : vector<16x8xbf16>, vector<32x8xbf16>, vector<16x32xf32> -> vector<16x32xf32>
    %cst_25 = arith.constant dense<0xFF800000> : vector<16xf32>
    %34 = vector.multi_reduction <maximumf>, %33, %cst_25 [1] : vector<16x32xf32> to vector<16xf32>
    %35 = vector.shape_cast %34 : vector<16xf32> to vector<16x1xf32>
    %36 = vector.broadcast %35 : vector<16x1xf32> to vector<16x32xf32>
    %37 = arith.subf %33, %36 : vector<16x32xf32>
    %38 = math.exp %37 : vector<16x32xf32>
    %cst_26 = arith.constant dense<0.000000e+00> : vector<16xf32>
    %39 = vector.multi_reduction <add>, %38, %cst_26 [1] : vector<16x32xf32> to vector<16xf32>
    %40 = vector.shape_cast %39 : vector<16xf32> to vector<16x1xf32>
    %41 = vector.broadcast %40 : vector<16x1xf32> to vector<16x32xf32>
    %42 = arith.divf %38, %41 : vector<16x32xf32>
    %43 = arith.truncf %42 : vector<16x32xf32> to vector<16x32xbf16>
    %cst_27 = arith.constant dense<0.000000e+00> : vector<16x8xf32>
    %44 = tpu.matmul %43, %31, %cst_27 {dimension_numbers = #tpu.dot_dimension_numbers<[1], [0], [0], [1], [0, 0, 1, 1], [], []>} : vector<16x32xbf16>, vector<32x8xbf16>, vector<16x8xf32> -> vector<16x8xf32>
    %c0_28 = arith.constant 0 : index
    %c8_29 = arith.constant 8 : index
    %45 = vector.load %arg17[%c0_28, %c8_29] : memref<16x32xf32, #tpu.memory_space<vmem>>, vector<16x8xf32>
    tpu.vector_store %arg17[%c0_28, %c8_29], %44 {strides = array<i32>} : memref<16x32xf32, #tpu.memory_space<vmem>>, vector<16x8xf32>,
    %c0_30 = arith.constant 0 : index
    %c16 = arith.constant 16 : index
    %46 = vector.load %arg6[%c0_30, %c16] : memref<32x32xbf16, #tpu.memory_space<vmem>>, vector<32x8xbf16>
    %c0_31 = arith.constant 0 : index
    %c16_32 = arith.constant 16 : index
    %47 = vector.load %arg7[%c0_31, %c16_32] : memref<32x32xbf16, #tpu.memory_space<vmem>>, vector<32x8xbf16>
    %48 = vector.extract_strided_slice %13 {offsets = [0, 16], sizes = [16, 8], strides = [1, 1]} : vector<16x32xbf16> to vector<16x8xbf16>
    %cst_33 = arith.constant dense<0.000000e+00> : vector<16x32xf32>
    %49 = tpu.matmul %48, %46, %cst_33 {dimension_numbers = #tpu.dot_dimension_numbers<[1], [1], [0], [0], [0, 0, 1, 0], [], []>} : vector<16x8xbf16>, vector<32x8xbf16>, vector<16x32xf32> -> vector<16x32xf32>
    %cst_34 = arith.constant dense<0xFF800000> : vector<16xf32>
    %50 = vector.multi_reduction <maximumf>, %49, %cst_34 [1] : vector<16x32xf32> to vector<16xf32>
    %51 = vector.shape_cast %50 : vector<16xf32> to vector<16x1xf32>
    %52 = vector.broadcast %51 : vector<16x1xf32> to vector<16x32xf32>
    %53 = arith.subf %49, %52 : vector<16x32xf32>
    %54 = math.exp %53 : vector<16x32xf32>
    %cst_35 = arith.constant dense<0.000000e+00> : vector<16xf32>
    %55 = vector.multi_reduction <add>, %54, %cst_35 [1] : vector<16x32xf32> to vector<16xf32>
    %56 = vector.shape_cast %55 : vector<16xf32> to vector<16x1xf32>
    %57 = vector.broadcast %56 : vector<16x1xf32> to vector<16x32xf32>
    %58 = arith.divf %54, %57 : vector<16x32xf32>
    %59 = arith.truncf %58 : vector<16x32xf32> to vector<16x32xbf16>
    %cst_36 = arith.constant dense<0.000000e+00> : vector<16x8xf32>
    %60 = tpu.matmul %59, %47, %cst_36 {dimension_numbers = #tpu.dot_dimension_numbers<[1], [0], [0], [1], [0, 0, 1, 1], [], []>} : vector<16x32xbf16>, vector<32x8xbf16>, vector<16x8xf32> -> vector<16x8xf32>
    %c0_37 = arith.constant 0 : index
    %c16_38 = arith.constant 16 : index
    %61 = vector.load %arg17[%c0_37, %c16_38] : memref<16x32xf32, #tpu.memory_space<vmem>>, vector<16x8xf32>
    tpu.vector_store %arg17[%c0_37, %c16_38], %60 {strides = array<i32>} : memref<16x32xf32, #tpu.memory_space<vmem>>, vector<16x8xf32>,
    %c0_39 = arith.constant 0 : index
    %c24 = arith.constant 24 : index
    %62 = vector.load %arg6[%c0_39, %c24] : memref<32x32xbf16, #tpu.memory_space<vmem>>, vector<32x8xbf16>
    %c0_40 = arith.constant 0 : index
    %c24_41 = arith.constant 24 : index
    %63 = vector.load %arg7[%c0_40, %c24_41] : memref<32x32xbf16, #tpu.memory_space<vmem>>, vector<32x8xbf16>
    %64 = vector.extract_strided_slice %13 {offsets = [0, 24], sizes = [16, 8], strides = [1, 1]} : vector<16x32xbf16> to vector<16x8xbf16>
    %cst_42 = arith.constant dense<0.000000e+00> : vector<16x32xf32>
    %65 = tpu.matmul %64, %62, %cst_42 {dimension_numbers = #tpu.dot_dimension_numbers<[1], [1], [0], [0], [0, 0, 1, 0], [], []>} : vector<16x8xbf16>, vector<32x8xbf16>, vector<16x32xf32> -> vector<16x32xf32>
    %cst_43 = arith.constant dense<0xFF800000> : vector<16xf32>
    %66 = vector.multi_reduction <maximumf>, %65, %cst_43 [1] : vector<16x32xf32> to vector<16xf32>
    %67 = vector.shape_cast %66 : vector<16xf32> to vector<16x1xf32>
    %68 = vector.broadcast %67 : vector<16x1xf32> to vector<16x32xf32>
    %69 = arith.subf %65, %68 : vector<16x32xf32>
    %70 = math.exp %69 : vector<16x32xf32>
    %cst_44 = arith.constant dense<0.000000e+00> : vector<16xf32>
    %71 = vector.multi_reduction <add>, %70, %cst_44 [1] : vector<16x32xf32> to vector<16xf32>
    %72 = vector.shape_cast %71 : vector<16xf32> to vector<16x1xf32>
    %73 = vector.broadcast %72 : vector<16x1xf32> to vector<16x32xf32>
    %74 = arith.divf %70, %73 : vector<16x32xf32>
    %75 = arith.truncf %74 : vector<16x32xf32> to vector<16x32xbf16>
    %cst_45 = arith.constant dense<0.000000e+00> : vector<16x8xf32>
    %76 = tpu.matmul %75, %63, %cst_45 {dimension_numbers = #tpu.dot_dimension_numbers<[1], [0], [0], [1], [0, 0, 1, 1], [], []>} : vector<16x32xbf16>, vector<32x8xbf16>, vector<16x8xf32> -> vector<16x8xf32>
    %c0_46 = arith.constant 0 : index
    %c24_47 = arith.constant 24 : index
    %77 = vector.load %arg17[%c0_46, %c24_47] : memref<16x32xf32, #tpu.memory_space<vmem>>, vector<16x8xf32>
    tpu.vector_store %arg17[%c0_46, %c24_47], %76 {strides = array<i32>} : memref<16x32xf32, #tpu.memory_space<vmem>>, vector<16x8xf32>,
    %c0_48 = arith.constant 0 : index
    %c0_49 = arith.constant 0 : index
    %78 = vector.load %arg17[%c0_48, %c0_49] : memref<16x32xf32, #tpu.memory_space<vmem>>, vector<16x32xf32>
    %c0_50 = arith.constant 0 : index
    %c0_51 = arith.constant 0 : index
    %79 = vector.load %arg8[%c0_50, %c0_51] : memref<32x32xf32, #tpu.memory_space<vmem>>, vector<32x32xf32>
    %cst_52 = arith.constant dense<0.000000e+00> : vector<16x32xf32>
    %80 = tpu.matmul %78, %79, %cst_52 {dimension_numbers = #tpu.dot_dimension_numbers<[1], [0], [0], [1], [0, 0, 1, 1], [], []>} : vector<16x32xf32>, vector<32x32xf32>, vector<16x32xf32> -> vector<16x32xf32>
    %c0_53 = arith.constant 0 : index
    %c0_54 = arith.constant 0 : index
    %81 = vector.load %arg9[%c0_53, %c0_54] : memref<1x32xf32, #tpu.memory_space<vmem>>, vector<1x32xf32>
    %82 = vector.broadcast %81 : vector<1x32xf32> to vector<16x32xf32>
    %83 = arith.addf %80, %82 : vector<16x32xf32>
    %84 = arith.addf %83, %7 : vector<16x32xf32>
    %cst_55 = arith.constant dense<0.000000e+00> : vector<16xf32>
    %85 = vector.multi_reduction <add>, %84, %cst_55 [1] : vector<16x32xf32> to vector<16xf32>
    %86 = vector.shape_cast %85 : vector<16xf32> to vector<16x1xf32>
    %cst_56 = arith.constant 3.200000e+01 : f32
    %87 = vector.broadcast %cst_56 : f32 to vector<16x1xf32>
    %88 = arith.divf %86, %87 : vector<16x1xf32>
    %89 = vector.broadcast %88 : vector<16x1xf32> to vector<16x32xf32>
    %90 = arith.subf %84, %89 : vector<16x32xf32>
    %91 = arith.mulf %90, %90 : vector<16x32xf32>
    %cst_57 = arith.constant dense<0.000000e+00> : vector<16xf32>
    %92 = vector.multi_reduction <add>, %91, %cst_57 [1] : vector<16x32xf32> to vector<16xf32>
    %93 = vector.shape_cast %92 : vector<16xf32> to vector<16x1xf32>
    %cst_58 = arith.constant 3.200000e+01 : f32
    %94 = vector.broadcast %cst_58 : f32 to vector<16x1xf32>
    %95 = arith.divf %93, %94 : vector<16x1xf32>
    %96 = vector.broadcast %88 : vector<16x1xf32> to vector<16x32xf32>
    %97 = arith.subf %84, %96 : vector<16x32xf32>
    %cst_59 = arith.constant 9.99999974E-6 : f32
    %98 = vector.broadcast %cst_59 : f32 to vector<16x1xf32>
    %99 = arith.addf %95, %98 : vector<16x1xf32>
    %100 = math.rsqrt %99 : vector<16x1xf32>
    %101 = vector.broadcast %100 : vector<16x1xf32> to vector<16x32xf32>
    %102 = arith.mulf %97, %101 : vector<16x32xf32>
    %c0_60 = arith.constant 0 : index
    %c0_61 = arith.constant 0 : index
    %103 = vector.load %arg10[%c0_60, %c0_61] : memref<1x32xf32, #tpu.memory_space<vmem>>, vector<1x32xf32>
    %104 = vector.broadcast %103 : vector<1x32xf32> to vector<16x32xf32>
    %105 = arith.mulf %102, %104 : vector<16x32xf32>
    %c0_62 = arith.constant 0 : index
    %c0_63 = arith.constant 0 : index
    %106 = vector.load %arg11[%c0_62, %c0_63] : memref<1x32xf32, #tpu.memory_space<vmem>>, vector<1x32xf32>
    %107 = vector.broadcast %106 : vector<1x32xf32> to vector<16x32xf32>
    %108 = arith.addf %105, %107 : vector<16x32xf32>
    %cst_64 = arith.constant 0.000000e+00 : f32
    %109 = vector.broadcast %cst_64 : f32 to vector<16x32xf32>
    %110 = arith.maximumf %108, %109 : vector<16x32xf32>
    %c0_65 = arith.constant 0 : index
    %c0_66 = arith.constant 0 : index
    %111 = vector.load %arg12[%c0_65, %c0_66] : memref<32x64xf32, #tpu.memory_space<vmem>>, vector<32x64xf32>
    %cst_67 = arith.constant dense<0.000000e+00> : vector<16x64xf32>
    %112 = tpu.matmul %110, %111, %cst_67 {dimension_numbers = #tpu.dot_dimension_numbers<[1], [0], [0], [1], [0, 0, 1, 1], [], []>} : vector<16x32xf32>, vector<32x64xf32>, vector<16x64xf32> -> vector<16x64xf32>
    %c0_68 = arith.constant 0 : index
    %c0_69 = arith.constant 0 : index
    %113 = vector.load %arg13[%c0_68, %c0_69] : memref<1x64xf32, #tpu.memory_space<vmem>>, vector<1x64xf32>
    %114 = vector.broadcast %113 : vector<1x64xf32> to vector<16x64xf32>
    %115 = arith.addf %112, %114 : vector<16x64xf32>
    %cst_70 = arith.constant 0.000000e+00 : f32
    %116 = vector.broadcast %cst_70 : f32 to vector<16x64xf32>
    %117 = arith.maximumf %115, %116 : vector<16x64xf32>
    %c0_71 = arith.constant 0 : index
    %c0_72 = arith.constant 0 : index
    %118 = vector.load %arg14[%c0_71, %c0_72] : memref<64x16xf32, #tpu.memory_space<vmem>>, vector<64x16xf32>
    %cst_73 = arith.constant dense<0.000000e+00> : vector<16x16xf32>
    %119 = tpu.matmul %117, %118, %cst_73 {dimension_numbers = #tpu.dot_dimension_numbers<[1], [0], [0], [1], [0, 0, 1, 1], [], []>} : vector<16x64xf32>, vector<64x16xf32>, vector<16x16xf32> -> vector<16x16xf32>
    %c0_74 = arith.constant 0 : index
    %c0_75 = arith.constant 0 : index
    %120 = vector.load %arg15[%c0_74, %c0_75] : memref<1x16xf32, #tpu.memory_space<vmem>>, vector<1x16xf32>
    %121 = vector.broadcast %120 : vector<1x16xf32> to vector<16x16xf32>
    %122 = arith.addf %119, %121 : vector<16x16xf32>
    %123 = tpu.iota {dimensions = array<i32: 1>} : vector<16x16xi32>
    %124 = arith.negf %122 : vector<16x16xf32>
    %125 = math.exp %124 : vector<16x16xf32>
    %cst_76 = arith.constant 1.000000e+00 : f32
    %126 = vector.broadcast %cst_76 : f32 to vector<16x16xf32>
    %127 = arith.addf %126, %125 : vector<16x16xf32>
    %128 = arith.divf %126, %127 : vector<16x16xf32>
    %c0_i32 = arith.constant 0 : i32
    %129 = vector.broadcast %c0_i32 : i32 to vector<16x16xi32>
    %130 = arith.cmpi sge, %123, %129 : vector<16x16xi32>
    %c3_i32 = arith.constant 3 : i32
    %131 = vector.broadcast %c3_i32 : i32 to vector<16x16xi32>
    %132 = arith.cmpi slt, %123, %131 : vector<16x16xi32>
    %133 = arith.andi %130, %132 : vector<16x16xi1>
    %cst_77 = arith.constant -1.000000e+30 : f32
    %134 = vector.broadcast %cst_77 : f32 to vector<16x16xf32>
    %135 = arith.select %133, %122, %134 : vector<16x16xi1>, vector<16x16xf32>
    %cst_78 = arith.constant dense<0xFF800000> : vector<16xf32>
    %136 = vector.multi_reduction <maximumf>, %135, %cst_78 [1] : vector<16x16xf32> to vector<16xf32>
    %137 = vector.shape_cast %136 : vector<16xf32> to vector<16x1xf32>
    %138 = vector.broadcast %137 : vector<16x1xf32> to vector<16x16xf32>
    %139 = arith.subf %122, %138 : vector<16x16xf32>
    %cst_79 = arith.constant 0.000000e+00 : f32
    %140 = vector.broadcast %cst_79 : f32 to vector<16x16xf32>
    %141 = arith.minimumf %139, %140 : vector<16x16xf32>
    %142 = math.exp %141 : vector<16x16xf32>
    %cst_80 = arith.constant 0.000000e+00 : f32
    %143 = vector.broadcast %cst_80 : f32 to vector<16x16xf32>
    %144 = arith.select %133, %142, %143 : vector<16x16xi1>, vector<16x16xf32>
    %cst_81 = arith.constant dense<0.000000e+00> : vector<16xf32>
    %145 = vector.multi_reduction <add>, %144, %cst_81 [1] : vector<16x16xf32> to vector<16xf32>
    %146 = vector.shape_cast %145 : vector<16xf32> to vector<16x1xf32>
    %147 = math.log %146 : vector<16x1xf32>
    %148 = arith.addf %137, %147 : vector<16x1xf32>
    %149 = vector.broadcast %148 : vector<16x1xf32> to vector<16x16xf32>
    %150 = arith.subf %122, %149 : vector<16x16xf32>
    %151 = arith.select %133, %150, %128 : vector<16x16xi1>, vector<16x16xf32>
    %c3_i32_82 = arith.constant 3 : i32
    %152 = vector.broadcast %c3_i32_82 : i32 to vector<16x16xi32>
    %153 = arith.cmpi sge, %123, %152 : vector<16x16xi32>
    %c7_i32 = arith.constant 7 : i32
    %154 = vector.broadcast %c7_i32 : i32 to vector<16x16xi32>
    %155 = arith.cmpi slt, %123, %154 : vector<16x16xi32>
    %156 = arith.andi %153, %155 : vector<16x16xi1>
    %cst_83 = arith.constant -1.000000e+30 : f32
    %157 = vector.broadcast %cst_83 : f32 to vector<16x16xf32>
    %158 = arith.select %156, %122, %157 : vector<16x16xi1>, vector<16x16xf32>
    %cst_84 = arith.constant dense<0xFF800000> : vector<16xf32>
    %159 = vector.multi_reduction <maximumf>, %158, %cst_84 [1] : vector<16x16xf32> to vector<16xf32>
    %160 = vector.shape_cast %159 : vector<16xf32> to vector<16x1xf32>
    %161 = vector.broadcast %160 : vector<16x1xf32> to vector<16x16xf32>
    %162 = arith.subf %122, %161 : vector<16x16xf32>
    %cst_85 = arith.constant 0.000000e+00 : f32
    %163 = vector.broadcast %cst_85 : f32 to vector<16x16xf32>
    %164 = arith.minimumf %162, %163 : vector<16x16xf32>
    %165 = math.exp %164 : vector<16x16xf32>
    %cst_86 = arith.constant 0.000000e+00 : f32
    %166 = vector.broadcast %cst_86 : f32 to vector<16x16xf32>
    %167 = arith.select %156, %165, %166 : vector<16x16xi1>, vector<16x16xf32>
    %cst_87 = arith.constant dense<0.000000e+00> : vector<16xf32>
    %168 = vector.multi_reduction <add>, %167, %cst_87 [1] : vector<16x16xf32> to vector<16xf32>
    %169 = vector.shape_cast %168 : vector<16xf32> to vector<16x1xf32>
    %170 = math.log %169 : vector<16x1xf32>
    %171 = arith.addf %160, %170 : vector<16x1xf32>
    %172 = vector.broadcast %171 : vector<16x1xf32> to vector<16x16xf32>
    %173 = arith.subf %122, %172 : vector<16x16xf32>
    %174 = arith.select %156, %173, %151 : vector<16x16xi1>, vector<16x16xf32>
    %c7_i32_88 = arith.constant 7 : i32
    %175 = vector.broadcast %c7_i32_88 : i32 to vector<16x16xi32>
    %176 = arith.cmpi sge, %123, %175 : vector<16x16xi32>
    %c10_i32 = arith.constant 10 : i32
    %177 = vector.broadcast %c10_i32 : i32 to vector<16x16xi32>
    %178 = arith.cmpi slt, %123, %177 : vector<16x16xi32>
    %179 = arith.andi %176, %178 : vector<16x16xi1>
    %cst_89 = arith.constant -1.000000e+30 : f32
    %180 = vector.broadcast %cst_89 : f32 to vector<16x16xf32>
    %181 = arith.select %179, %122, %180 : vector<16x16xi1>, vector<16x16xf32>
    %cst_90 = arith.constant dense<0xFF800000> : vector<16xf32>
    %182 = vector.multi_reduction <maximumf>, %181, %cst_90 [1] : vector<16x16xf32> to vector<16xf32>
    %183 = vector.shape_cast %182 : vector<16xf32> to vector<16x1xf32>
    %184 = vector.broadcast %183 : vector<16x1xf32> to vector<16x16xf32>
    %185 = arith.subf %122, %184 : vector<16x16xf32>
    %cst_91 = arith.constant 0.000000e+00 : f32
    %186 = vector.broadcast %cst_91 : f32 to vector<16x16xf32>
    %187 = arith.minimumf %185, %186 : vector<16x16xf32>
    %188 = math.exp %187 : vector<16x16xf32>
    %cst_92 = arith.constant 0.000000e+00 : f32
    %189 = vector.broadcast %cst_92 : f32 to vector<16x16xf32>
    %190 = arith.select %179, %188, %189 : vector<16x16xi1>, vector<16x16xf32>
    %cst_93 = arith.constant dense<0.000000e+00> : vector<16xf32>
    %191 = vector.multi_reduction <add>, %190, %cst_93 [1] : vector<16x16xf32> to vector<16xf32>
    %192 = vector.shape_cast %191 : vector<16xf32> to vector<16x1xf32>
    %193 = math.log %192 : vector<16x1xf32>
    %194 = arith.addf %183, %193 : vector<16x1xf32>
    %195 = vector.broadcast %194 : vector<16x1xf32> to vector<16x16xf32>
    %196 = arith.subf %122, %195 : vector<16x16xf32>
    %197 = arith.select %179, %196, %174 : vector<16x16xi1>, vector<16x16xf32>
    %c0_94 = arith.constant 0 : index
    %c0_95 = arith.constant 0 : index
    %198 = vector.load %arg16[%c0_94, %c0_95] : memref<16x16xf32, #tpu.memory_space<vmem>>, vector<16x16xf32>
    tpu.vector_store %arg16[%c0_94, %c0_95], %197 {strides = array<i32>} : memref<16x16xf32, #tpu.memory_space<vmem>>, vector<16x16xf32>,
    return
  }
  func.func @transform_0(%arg0: i32) -> (i32, i32) {
    %c0_i32 = arith.constant 0 : i32
    %c0_i32_0 = arith.constant 0 : i32
    return %arg0, %c0_i32 : i32, i32
  }
  func.func @transform_1(%arg0: i32) -> (i32, i32) {
    %c0_i32 = arith.constant 0 : i32
    %c0_i32_0 = arith.constant 0 : i32
    %c0_i32_1 = arith.constant 0 : i32
    return %c0_i32, %c0_i32_0 : i32, i32
  }
  func.func @transform_2(%arg0: i32) -> (i32, i32) {
    %c0_i32 = arith.constant 0 : i32
    %c0_i32_0 = arith.constant 0 : i32
    %c0_i32_1 = arith.constant 0 : i32
    return %c0_i32, %c0_i32_0 : i32, i32
  }
  func.func @transform_3(%arg0: i32) -> (i32, i32) {
    %c0_i32 = arith.constant 0 : i32
    %c0_i32_0 = arith.constant 0 : i32
    %c0_i32_1 = arith.constant 0 : i32
    return %c0_i32, %c0_i32_0 : i32, i32
  }
  func.func @transform_4(%arg0: i32) -> (i32, i32) {
    %c0_i32 = arith.constant 0 : i32
    %c0_i32_0 = arith.constant 0 : i32
    %c0_i32_1 = arith.constant 0 : i32
    return %c0_i32, %c0_i32_0 : i32, i32
  }
  func.func @transform_5(%arg0: i32) -> (i32, i32) {
    %c0_i32 = arith.constant 0 : i32
    %c0_i32_0 = arith.constant 0 : i32
    %c0_i32_1 = arith.constant 0 : i32
    return %c0_i32, %c0_i32_0 : i32, i32
  }
  func.func @transform_6(%arg0: i32) -> (i32, i32) {
    %c0_i32 = arith.constant 0 : i32
    %c0_i32_0 = arith.constant 0 : i32
    %c0_i32_1 = arith.constant 0 : i32
    return %c0_i32, %c0_i32_0 : i32, i32
  }
  func.func @transform_7(%arg0: i32) -> (i32, i32) {
    %c0_i32 = arith.constant 0 : i32
    %c0_i32_0 = arith.constant 0 : i32
    %c0_i32_1 = arith.constant 0 : i32
    return %c0_i32, %c0_i32_0 : i32, i32
  }
  func.func @transform_8(%arg0: i32) -> (i32, i32) {
    %c0_i32 = arith.constant 0 : i32
    %c0_i32_0 = arith.constant 0 : i32
    %c0_i32_1 = arith.constant 0 : i32
    return %c0_i32, %c0_i32_0 : i32, i32
  }
  func.func @transform_9(%arg0: i32) -> (i32, i32) {
    %c0_i32 = arith.constant 0 : i32
    %c0_i32_0 = arith.constant 0 : i32
    %c0_i32_1 = arith.constant 0 : i32
    return %c0_i32, %c0_i32_0 : i32, i32
  }
  func.func @transform_10(%arg0: i32) -> (i32, i32) {
    %c0_i32 = arith.constant 0 : i32
    %c0_i32_0 = arith.constant 0 : i32
    %c0_i32_1 = arith.constant 0 : i32
    return %c0_i32, %c0_i32_0 : i32, i32
  }
  func.func @transform_11(%arg0: i32) -> (i32, i32) {
    %c0_i32 = arith.constant 0 : i32
    %c0_i32_0 = arith.constant 0 : i32
    %c0_i32_1 = arith.constant 0 : i32
    return %c0_i32, %c0_i32_0 : i32, i32
  }
  func.func @transform_12(%arg0: i32) -> (i32, i32) {
    %c0_i32 = arith.constant 0 : i32
    %c0_i32_0 = arith.constant 0 : i32
    %c0_i32_1 = arith.constant 0 : i32
    return %c0_i32, %c0_i32_0 : i32, i32
  }
  func.func @transform_13(%arg0: i32) -> (i32, i32) {
    %c0_i32 = arith.constant 0 : i32
    %c0_i32_0 = arith.constant 0 : i32
    %c0_i32_1 = arith.constant 0 : i32
    return %c0_i32, %c0_i32_0 : i32, i32
  }
  func.func @transform_14(%arg0: i32) -> (i32, i32) {
    %c0_i32 = arith.constant 0 : i32
    %c0_i32_0 = arith.constant 0 : i32
    %c0_i32_1 = arith.constant 0 : i32
    return %c0_i32, %c0_i32_0 : i32, i32
  }
  func.func @transform_15(%arg0: i32) -> (i32, i32) {
    %c0_i32 = arith.constant 0 : i32
    %c0_i32_0 = arith.constant 0 : i32
    return %arg0, %c0_i32 : i32, i32
  }
}

</mosaic_0001>

<bundles_post_ra>
// kernel: outcome_attention_forward.2
= control target key start
LH: loop header
LB: loop body
LE: loop exit
PB: predicated region body
PF: predicated region fallthrough
CT: control target
= control target key end

     0   :  { %s670_s21 = smov 0   ;;  %s718_s0 = inlined_call_operand.vmem [shape: f32[32,16], index: 0, kind: input, shape index: {}]   ;;  %s719_s1 = inlined_call_operand.vmem [shape: f32[16,32], index: 1, kind: input, shape index: {}]   ;;  %s720_s2 = inlined_call_operand.vmem [shape: f32[1,32], index: 2, kind: input, shape index: {}]   ;;  %s721_s3 = inlined_call_operand.vmem [shape: f32[32,64], index: 3, kind: input, shape index: {}]   ;;  %s722_s4 = inlined_call_operand.vmem [shape: f32[1,64], index: 4, kind: input, shape index: {}]   ;;  %s723_s5 = inlined_call_operand.vmem [shape: bf16[32,32], index: 5, kind: output, shape index: {0}]   ;;  %s724_s6 = inlined_call_operand.vmem [shape: bf16[32,32], index: 6, kind: output, shape index: {1}]  }
   0x1 LB: > { %s566_s22 = sadd.s32 4294967295, %s632_s21   ;;  %p570_p0 = scmp.ge.s32.totalorder %s632_s21, 1  ;;  %s632_s21 = sphi %s670_s21, %s17_s21  }
   0x2   : > { %p216_p1 = scmp.lt.s32.totalorder %s632_s21, 3 }
   0x4   : > { %p217_p2 = pnand %p570_p0, %p216_p1 }
   0x5   : > { %s571_s27 = sshll.u32 (!%p217_p2), %s566_s22, 1  ;;  %s634_s25 = smov (!%p217_p2), 96  }
   0x6   : > { %220 = sbr.rel (%p217_p2) target bundleno = 535 (0x217), region = 40  ;;  %p252_p3 = scmp.lt.s32.totalorder (!%p217_p2), %s571_s27, 3 }
   0xb   : > { %v272_v0 = vld [vmem:[%s719_s1 + $0x8] sm:$0xff]  ;;  %v271_v1 = vld [vmem:[%s719_s1] sm:$0xff]  ;;  %s726_s27 = smov (!%p252_p3, %s571_s27), 3  ;;  %vm280_vm0 = vcmask 130048   ;;  %v367_v4 = vld [vmem:[%s721_s3 + $0x18] sm:$0xff]  ;;  %vm375_vm1 = vcmask 261120  }
   0xc   : > { %599 = vmatprep.subr.mxu0 %v272_v0  ;;  %s572_s28 = sshll.u32 %s726_s27, 3  ;;  %606 = vmatprep.subr.mxu1 %v367_v4  ;;  %v366_v5 = vld [vmem:[%s721_s3 + $0x10] sm:$0xff]  ;;  %v365_v6 = vld [vmem:[%s721_s3 + $0x8] sm:$0xff]  ;;  %v364_v7 = vld [vmem:[%s721_s3] sm:$0xff]  ;;  %s574_s20 = sshll.u32 %s726_s27, 2  ;;  %vm465_vm2 = vcmask 257024  }
   0xd   : > { %600 = vmatpush3.msra.mxu0 %v272_v0  ;;  %s255_s7 = scalar_lea.vmem %s718_s0, %s572_s28  ;;  %607 = vmatpush3.msra.mxu1 %v367_v4  ;;  %v577_v8 = vld [vmem:[%s720_s2] ss:$0 sm:$0xff]  ;;  %s261_s24 = scalar_lea.vmem %s723_s5, %s574_s20 }
   0xe   : > { %601 = vmatprep.subr.mxu0 %v271_v1  ;;  %v269_v2 = vld [vmem:[%s255_s7] sm:$0xff]  ;;  %v270_v3 = vld [vmem:[%s255_s7 + $0x8] sm:$0xff]  ;;  %608 = vmatprep.subr.mxu1 %v366_v5  ;;  %s267_s29 = scalar_lea.vmem %s724_s6, %s574_s20 }
   0xf   : > { %602 = vmatpush3.msra.mxu0 %v271_v1  ;;  %603 = vmatprep.mubr.msk.f32.mxu0 %vm280_vm0, %v269_v2  ;;  %v580_v15 = vld [vmem:[%s722_s4] ss:$0 sm:$0xff] }
  0x10   : > { %604 = vmatmul.mubr.msk.f32.vlgmr.msra.gmra.mxu0 %vm280_vm0, %v270_v3  ;;  %609 = vmatpush3.msra.mxu1 %v366_v5 }
  0x11   : > { %610 = vmatprep.subr.mxu1 %v365_v6 }
  0x12   : > { %611 = vmatpush3.msra.mxu1 %v365_v6 }
  0x13   : > { %612 = vmatprep.subr.mxu1 %v364_v7 }
  0x14   : > { %613 = vmatpush3.msra.mxu1 %v364_v7 }
  0xd0   : > { %v605_v9 = vpop.f32.mrf.mxu0 }
  0xd1   : > { %v359_v10 = vadd.f32 %v605_v9, %v577_v8 }
  0xd2   : > { %v353_v11 = vpop.f32.mrf.mxu0 }
  0xd3   : > { %v354_v12 = vadd.f32 %v577_v8, %v353_v11  ;;  %v363_v14 = vmax.f32 %v359_v10, 0.0 }
  0xd5   : > { %v362_v13 = vmax.f32 %v354_v12, 0.0 }
  0xd7   : > { %614 = vmatprep.mubr.msk.f32.mxu1 %vm375_vm1, %v362_v13 }
  0xd8   : > { %615 = vmatmul.mubr.msk.f32.vlgmr.msra.gmra.mxu1 %vm375_vm1, %v363_v14 }
 0x198   : > { %v616_v16 = vpop.f32.mrf.mxu1 }
 0x199   : > { %v454_v17 = vadd.f32 %v616_v16, %v580_v15 }
 0x19a   : > { %v448_v18 = vpop.f32.mrf.mxu1 }
 0x19b   : > { %v449_v19 = vadd.f32 %v580_v15, %v448_v18  ;;  %v588_v21 = vpack.c.bf16 %v454_v17, %v454_v17 }
 0x19d   : > { %v587_v20 = vpack.c.bf16 %v449_v19, %v449_v19  ;;  %467 = vst.msk [vmem:[%s261_s24 + $0x4] sm:$0xf] %vm465_vm2, %v588_v21 }
 0x19f   : > { %468 = vrot.lane.b32.xlu0 %v587_v20, %s634_s25  ;;  %466 = vst.msk [vmem:[%s261_s24] sm:$0xf] %vm465_vm2, %v587_v20 }
 0x1a3   : > { %470 = vrot.lane.b32.xlu0 %v588_v21, %s634_s25 }
 0x211   : > { %v469_v22 = vpop.permute.xlu0 %468 }
 0x212   : > { %474 = vst.msk [vmem:[%s267_s29] sm:$0xf] %vm465_vm2, %v469_v22 }
 0x215   : > { %v471_v23 = vpop.permute.xlu0 %470 }
 0x216   : > { %475 = vst.msk [vmem:[%s267_s29 + $0x4] sm:$0xf] %vm465_vm2, %v471_v23 }
 0x217 PF: > { %s17_s21 = sadd.s32 1, %s632_s21  }
 0x218   : > { %p14_p4 = scmp.ge.s32.totalorder %s17_s21, 4  }
 0x21a   :  { %16 = sbr.rel (!%p14_p4) target bundleno = 1 (0x1), region = 82 }

// kernel: outcome_attention_forward.3
= control target key start
LH: loop header
LB: loop body
LE: loop exit
PB: predicated region body
PF: predicated region fallthrough
CT: control target
= control target key end

     0   :  { %s2289_s18 = smov 0   ;;  %s2682_s0 = inlined_call_operand.vmem [shape: f32[32,16], index: 0, kind: input, shape index: {}]   ;;  %s2683_s1 = inlined_call_operand.vmem [shape: f32[16,32], index: 1, kind: input, shape index: {}]   ;;  %s2684_s2 = inlined_call_operand.vmem [shape: f32[1,32], index: 2, kind: input, shape index: {}]   ;;  %s2685_s3 = inlined_call_operand.vmem [shape: f32[32,32], index: 3, kind: input, shape index: {}]   ;;  %s2686_s4 = inlined_call_operand.vmem [shape: f32[1,32], index: 4, kind: input, shape index: {}]   ;;  %s2687_s5 = inlined_call_operand.vmem [shape: bf16[32,32], index: 5, kind: input, shape index: {}]   ;;  %s2688_s6 = inlined_call_operand.vmem [shape: bf16[32,32], index: 6, kind: input, shape index: {}]   ;;  %s2689_s7 = inlined_call_operand.vmem [shape: f32[32,32], index: 7, kind: input, shape index: {}]   ;;  %s2690_s8 = inlined_call_operand.vmem [shape: f32[1,32], index: 8, kind: input, shape index: {}]   ;;  %s2691_s9 = inlined_call_operand.vmem [shape: f32[1,32], index: 9, kind: input, shape index: {}]   ;;  %s2692_s10 = inlined_call_operand.vmem [shape: f32[1,32], index: 10, kind: input, shape index: {}]   ;;  %s2693_s11 = inlined_call_operand.vmem [shape: f32[32,64], index: 11, kind: input, shape index: {}]   ;;  %s2694_s12 = inlined_call_operand.vmem [shape: f32[1,64], index: 12, kind: input, shape index: {}]   ;;  %s2695_s13 = inlined_call_operand.vmem [shape: f32[64,16], index: 13, kind: input, shape index: {}]   ;;  %s2696_s14 = inlined_call_operand.vmem [shape: f32[1,16], index: 14, kind: input, shape index: {}]   ;;  %s2697_s15 = inlined_call_operand.vmem [shape: f32[32,16], index: 15, kind: output, shape index: {}]  }
   0x1 LB: > { %s1860_s19 = sadd.s32 4294967295, %s2199_s18   ;;  %p1864_p0 = scmp.ge.s32.totalorder %s2199_s18, 1  ;;  %s2199_s18 = sphi %s2289_s18, %s25_s18  }
   0x2   : > { %p438_p1 = scmp.lt.s32.totalorder %s2199_s18, 3 }
   0x4   : > { %p439_p2 = pnand %p1864_p0, %p438_p1 }
   0x5   : > { %s1865_s24 = sshll.u32 (!%p439_p2), %s1860_s19, 1  ;;  %s2203_s21 = smov (!%p439_p2), 120  }
   0x6   : > { %442 = sbr.rel (%p439_p2) target bundleno = 4067 (0xfe3), region = 80  ;;  %p487_p3 = scmp.lt.s32.totalorder (!%p439_p2), %s1865_s24, 3 }
   0x7   : > { %s2204_s20 = smov (!%p439_p2), 112   ;;  %s2205_s16 = smov (!%p439_p2), 104  }
   0x8   : > { %s2206_s27 = smov (!%p439_p2), 8  }
   0xb   : > { %v502_v0 = vld [vmem:[%s2683_s1 + $0x8] sm:$0xff]  ;;  %v501_v1 = vld [vmem:[%s2683_s1] sm:$0xff]  ;;  %s2703_s24 = smov (!%p487_p3, %s1865_s24), 3  ;;  %vm510_vm0 = vcmask 130048   ;;  %v597_v4 = vld [vmem:[%s2685_s3 + $0x18] sm:$0xff]  ;;  %vm706_vm1 = vcmask 64512  }
   0xc   : > { %1970 = vmatprep.subr.mxu1 %v502_v0  ;;  %s1866_s25 = sshll.u32 %s2703_s24, 3  ;;  %v596_v5 = vld [vmem:[%s2685_s3 + $0x10] sm:$0xff]  ;;  %v595_v6 = vld [vmem:[%s2685_s3 + $0x8] sm:$0xff]  ;;  %v594_v7 = vld [vmem:[%s2685_s3] sm:$0xff]  ;;  %v2201_v9 = vmov 0.0   ;;  %vm605_vm2 = vcmask 261120  }
   0xd   : > { %1971 = vmatpush3.msra.mxu1 %v502_v0  ;;  %s490_s28 = scalar_lea.vmem %s2682_s0, %s1866_s25  ;;  %v2109_v8 = vld [vmem:[%s2687_s5 + $0x8] sm:$0xff]   ;;  %1988 = vmatprep.subr.bf16.mxu0 %v2201_v9  ;;  %v1869_v11 = vld [vmem:[%s2684_s2] ss:$0 sm:$0xff]  ;;  %vm2202_vm3 = vmmov 0   ;;  %vm1004_vm4 = vcmask 130112   ;;  %vm1172_vm5 = vcmask 195712  }
   0xe   : > { %1972 = vmatprep.subr.mxu1 %v501_v1  ;;  %v499_v2 = vld [vmem:[%s490_s28] sm:$0xff]  ;;  %v500_v3 = vld [vmem:[%s490_s28 + $0x8] sm:$0xff]  ;;  %v714_v10 = vsel %vm706_vm1, %v2109_v8, 0  ;;  %1992 = vmatprep.mubr.msk.bf16.mxu0 %vm2202_vm3, %v2201_v9  ;;  %vm1340_vm6 = vcmask 261312   ;;  %vm1595_vm7 = vcmask 523264  }
   0xf   : > { %1973 = vmatpush3.msra.mxu1 %v501_v1  ;;  %1974 = vmatprep.mubr.msk.f32.mxu1 %vm510_vm0, %v499_v2  ;;  %v2110_v18 = vld [vmem:[%s2687_s5] sm:$0xff]   ;;  %v2112_v32 = vld [vmem:[%s2687_s5 + $0x8] sm:$0xff]  }
  0x10   : > { %1975 = vmatmul.mubr.msk.f32.vlgmr.msra.gmra.mxu1 %vm510_vm0, %v500_v3  ;;  %1977 = vmatprep.subr.mxu1 %v597_v4  ;;  %v711_v19 = vsel %vm706_vm1, %v2110_v18, 0  ;;  %v1872_v21 = vld [vmem:[%s2686_s4] ss:$0 sm:$0xff]  ;;  %v2113_v44 = vld [vmem:[%s2688_s6 + $0x8] sm:$0xff]  }
  0x11   : > { %1978 = vmatpush3.msra.mxu1 %v597_v4  ;;  %1989 = vmatpush3.bf16.xpose.msra.mxu0 %v714_v10  ;;  %v2111_v43 = vld [vmem:[%s2687_s5] sm:$0xff]   ;;  %v2115_v4 = vld [vmem:[%s2688_s6 + $0x8] sm:$0xff]  }
  0x12   : > { %1979 = vmatprep.subr.mxu1 %v596_v5  ;;  %1990 = vmatprep.subr.bf16.mxu0 %v2201_v9  ;;  %v2114_v45 = vld [vmem:[%s2688_s6] sm:$0xff]  }
  0x13   : > { %1980 = vmatpush3.msra.mxu1 %v596_v5  ;;  %v2116_v5 = vld [vmem:[%s2687_s5 + $0x8] sm:$0xff]  }
  0x14   : > { %1981 = vmatprep.subr.mxu1 %v595_v6 }
  0x15   : > { %1982 = vmatpush3.msra.mxu1 %v595_v6  ;;  %v2117_v6 = vld [vmem:[%s2687_s5] sm:$0xff]  }
  0x16   : > { %1983 = vmatprep.subr.mxu1 %v594_v7 }
  0x17   : > { %1984 = vmatpush3.msra.mxu1 %v594_v7 }
  0x18   : > { %1996 = vmatprep.subr.bf16.mxu1 %v2201_v9 }
  0x19   : > { %1991 = vmatpush3.bf16.xpose.msra.mxu0 %v711_v19 }
  0x1a   : > { %2012 = vmatprep.subr.bf16.mxu0 %v2201_v9 }
  0xd0   : > { %v1976_v12 = vpop.f32.mrf.mxu1 }
  0xd1   : > { %v2335_v13 = vadd.f32 %v1976_v12, %v1869_v11 }
  0xd2   : > { %v583_v14 = vpop.f32.mrf.mxu1 }
  0xd3   : > { %v2337_v15 = vadd.f32 %v1869_v11, %v583_v14  ;;  %v593_v17 = vmax.f32 %v2335_v13, 0.0 }
  0xd5   : > { %v592_v16 = vmax.f32 %v2337_v15, 0.0  ;;  %v1489_v15 = vld [vmem:[%s2693_s11 + $0x18] sm:$0xff] }
  0xd7   : > { %1985 = vmatprep.mubr.msk.f32.mxu1 %vm605_vm2, %v592_v16 }
  0xd8   : > { %1986 = vmatmul.mubr.msk.f32.vlgmr.msra.gmra.mxu1 %vm605_vm2, %v593_v17 }
  0xd9   : > { %2000 = vmatprep.mubr.msk.bf16.mxu1 %vm2202_vm3, %v2201_v9  ;;  %1997 = vmatpush3.bf16.msra.mxu1 %v2113_v44 }
  0xda   : > { %1998 = vmatprep.subr.bf16.mxu1 %v2201_v9 }
  0xdd   : > { %1999 = vmatpush3.bf16.msra.mxu1 %v2114_v45 }
  0xde   : > { %2004 = vmatprep.subr.bf16.mxu1 %v2201_v9 }
 0x198   : > { %v1987_v20 = vpop.f32.mrf.mxu1 }
 0x199   : > { %v684_v23 = vadd.f32 %v1987_v20, %v1872_v21 }
 0x19a   : > { %v678_v22 = vpop.f32.mrf.mxu1 }
 0x19b   : > { %v679_v24 = vadd.f32 %v1872_v21, %v678_v22 }
 0x19d   : > { %v2359_v25 = vpack.c.bf16 %v684_v23, %v679_v24  ;;  %v2118_v23 = vld [vmem:[%s2688_s6] sm:$0xff]  }
 0x19f   : > { %1993 = vmatmul.mubr.msk.bf16.vlgmr.msra.gmra.mxu0 %vm706_vm1, %v2359_v25 }
 0x1a0   : > { %2016 = vmatprep.mubr.msk.bf16.mxu0 %vm2202_vm3, %v2201_v9 }
 0x25f   : > { %v750_v26 = vpop.f32.mrf.mxu0 }
 0x260   : > { %v757_v27 = vsel %vm605_vm2, %v750_v26, -inf }
 0x261   : > { %758 = vmax.xlane.f32.xlu0 %v757_v27  ;;  %v1994_v28 = vpop.f32.mrf.mxu0 }
 0x263   : > { %v753_v29 = vpop.f32.mrf.mxu0 }
 0x264   : > { %v760_v30 = vsel %vm605_vm2, %v753_v29, -inf }
 0x265   : > { %761 = vmax.xlane.f32.xlu0 %v760_v30  ;;  %v1995_v31 = vpop.f32.mrf.mxu0 }
 0x27b   : > { %861 = vrot.lane.b32.xlu0 %v2112_v32, %s2203_s21 }
 0x2ea   : > { %v759_v33 = vpop.xlane.xlu0 %758 }
 0x2eb   : > { %v763_v34 = vsub.f32 %v750_v26, %v759_v33 }
 0x2ed   : > { %v765_v35 = vmul.f32 1.442695, %v763_v34 }
 0x2ee   : > { %v762_v36 = vpop.xlane.xlu0 %761 }
 0x2ef   : > { %2125 = vpow2.f32 %v765_v35  ;;  %v764_v37 = vsub.f32 %v753_v29, %v762_v36 }
 0x2f1   : > { %v767_v38 = vmul.f32 1.442695, %v764_v37 }
 0x2f2   : > { %v862_v50 = vpop.permute.xlu0 %861 }
 0x2f3   : > { %2127 = vpow2.f32 %v767_v38  ;;  %v870_v53 = vsel %vm706_vm1, %v862_v50, 0  ;;  %v2122_v50 = vld [vmem:[%s2687_s5] sm:$0xff]  }
 0x2fc   : > { %v2126_v39 = vpop.eup %2125 }
 0x2fd   : > { %v769_v40 = vsel %vm605_vm2, %v2126_v39, 0.0 }
 0x2fe   : > { %770 = vadd.xlane.f32.xlu1 %v769_v40 }
 0x300   : > { %v2128_v41 = vpop.eup %2127 }
 0x301   : > { %v772_v42 = vsel %vm605_vm2, %v2128_v41, 0.0 }
 0x302   : > { %773 = vadd.xlane.f32.xlu1 %v772_v42 }
 0x313   : > { %859 = vrot.lane.b32.xlu1 %v2111_v43, %s2203_s21 }
 0x317   : > { %847 = vrot.lane.b32.xlu1 %v2359_v25, %s2203_s21 }
 0x387   : > { %v771_v46 = vpop.xlane.xlu1 %770 }
 0x388   : > { %2129 = vrcp.f32 %v771_v46 }
 0x38b   : > { %v774_v47 = vpop.xlane.xlu1 %773 }
 0x38c   : > { %2131 = vrcp.f32 %v774_v47 }
 0x38f   : > { %v860_v55 = vpop.permute.xlu1 %859 }
 0x390   : > { %v867_v56 = vsel %vm706_vm1, %v860_v55, 0 }
 0x393   : > { %v848_v57 = vpop.permute.xlu1 %847 }
 0x395   : > { %v2130_v48 = vpop.eup %2129 }
 0x396   : > { %v776_v51 = vmul.f32 %v2130_v48, %v2126_v39  ;;  %v2120_v48 = vld [vmem:[%s2688_s6] sm:$0xff]  }
 0x399   : > { %v2132_v49 = vpop.eup %2131 }
 0x39a   : > { %v778_v52 = vmul.f32 %v2132_v49, %v2128_v41  ;;  %v2121_v49 = vld [vmem:[%s2687_s5 + $0x8] sm:$0xff]  }
 0x39c   : > { %v779_v54 = vpack.c.bf16 %v778_v52, %v776_v51 }
 0x39e   : > { %2001 = vmatmul.mubr.msk.bf16.vlgmr.msra.gmra.mxu1 %vm605_vm2, %v779_v54 }
 0x39f   : > { %2005 = vmatpush3.bf16.xpose.msra.mxu1 %v870_v53  ;;  %2008 = vmatprep.mubr.msk.bf16.mxu1 %vm2202_vm3, %v2201_v9 }
 0x3a0   : > { %2006 = vmatprep.subr.bf16.mxu1 %v2201_v9 }
 0x3a7   : > { %2007 = vmatpush3.bf16.xpose.msra.mxu1 %v867_v56 }
 0x3a8   : > { %2028 = vmatprep.subr.bf16.mxu1 %v2201_v9 }
 0x3ae   : > { %2009 = vmatmul.mubr.msk.bf16.vlgmr.msra.gmra.mxu1 %vm706_vm1, %v848_v57 }
 0x3af   : > { %2032 = vmatprep.mubr.msk.bf16.mxu1 %vm2202_vm3, %v2201_v9 }
 0x45e   : > { %v829_v58 = vpop.f32.mrf.mxu1 }
 0x45f   : > { %836 = vst.msk [vmem:[#allocation2] sm:$0xff] %vm706_vm1, %v829_v58 }
 0x460   : > { %v2002_v59 = vpop.f32.mrf.mxu1 }
 0x462   : > { %v832_v60 = vpop.f32.mrf.mxu1 }
 0x463   : > { %837 = vst.msk [vmem:[#allocation2 + $0x8] sm:$0xff] %vm706_vm1, %v832_v60 }
 0x464   : > { %v2003_v61 = vpop.f32.mrf.mxu1 }
 0x465   : > { %v2119_v61 = vld [vmem:[%s2688_s6 + $0x8] sm:$0xff]  }
 0x46e   : > { %v906_v62 = vpop.f32.mrf.mxu1 }
 0x46f   : > { %v913_v63 = vsel %vm605_vm2, %v906_v62, -inf }
 0x470   : > { %914 = vmax.xlane.f32.xlu1 %v913_v63  ;;  %v2010_v0 = vpop.f32.mrf.mxu1 }
 0x472   : > { %v909_v1 = vpop.f32.mrf.mxu1 }
 0x473   : > { %v916_v2 = vsel %vm605_vm2, %v909_v1, -inf }
 0x474   : > { %917 = vmax.xlane.f32.xlu0 %v916_v2  ;;  %v2011_v3 = vpop.f32.mrf.mxu1 }
 0x481   : > { %948 = vrot.lane.b32.xlu1 %v2115_v4, %s2203_s21 }
 0x485   : > { %1029 = vrot.lane.b32.xlu1 %v2116_v5, %s2204_s20 }
 0x489   : > { %1027 = vrot.lane.b32.xlu1 %v2117_v6, %s2204_s20 }
 0x48d   : > { %1015 = vrot.lane.b32.xlu1 %v2359_v25, %s2204_s20 }
 0x4f9   : > { %v915_v7 = vpop.xlane.xlu1 %914 }
 0x4fa   : > { %v919_v8 = vsub.f32 %v906_v62, %v915_v7 }
 0x4fc   : > { %v921_v10 = vmul.f32 1.442695, %v919_v8 }
 0x4fd   : > { %v949_v11 = vpop.permute.xlu1 %948  ;;  %v918_v12 = vpop.xlane.xlu0 %917 }
 0x4fe   : > { %2133 = vpow2.f32 %v921_v10  ;;  %v920_v14 = vsub.f32 %v909_v1, %v918_v12  ;;  %2013 = vmatpush3.bf16.msra.mxu0 %v949_v11 }
 0x4ff   : > { %2014 = vmatprep.subr.bf16.mxu0 %v2201_v9 }
 0x500   : > { %v923_v18 = vmul.f32 1.442695, %v920_v14 }
 0x501   : > { %v1030_v32 = vpop.permute.xlu1 %1029 }
 0x502   : > { %2135 = vpow2.f32 %v923_v18  ;;  %v1038_v33 = vsel %vm706_vm1, %v1030_v32, 0 }
 0x505   : > { %v1028_v35 = vpop.permute.xlu1 %1027 }
 0x506   : > { %v1035_v36 = vsel %vm706_vm1, %v1028_v35, 0 }
 0x509   : > { %v1016_v37 = vpop.permute.xlu1 %1015 }
 0x50b   : > { %v2134_v19 = vpop.eup %2133 }
 0x50c   : > { %v925_v20 = vsel %vm605_vm2, %v2134_v19, 0.0 }
 0x50d   : > { %926 = vadd.xlane.f32.xlu0 %v925_v20 }
 0x50f   : > { %v2136_v21 = vpop.eup %2135 }
 0x510   : > { %v928_v22 = vsel %vm605_vm2, %v2136_v21, 0.0 }
 0x511   : > { %929 = vadd.xlane.f32.xlu0 %v928_v22 }
 0x527   : > { %946 = vrot.lane.b32.xlu0 %v2118_v23, %s2203_s21  ;;  %s2207_s21 = smov 16  }
 0x596   : > { %v927_v24 = vpop.xlane.xlu0 %926 }
 0x597   : > { %2137 = vrcp.f32 %v927_v24 }
 0x59a   : > { %v930_v26 = vpop.xlane.xlu0 %929 }
 0x59b   : > { %2139 = vrcp.f32 %v930_v26 }
 0x59e   : > { %v947_v27 = vpop.permute.xlu0 %946 }
 0x59f   : > { %2015 = vmatpush3.bf16.msra.mxu0 %v947_v27  ;;  %v2123_v27 = vld [vmem:[%s2688_s6 + $0x8] sm:$0xff]  }
 0x5a0   : > { %2020 = vmatprep.subr.bf16.mxu0 %v2201_v9 }
 0x5a4   : > { %v2138_v28 = vpop.eup %2137 }
 0x5a5   : > { %v932_v30 = vmul.f32 %v2138_v28, %v2134_v19 }
 0x5a8   : > { %v2140_v29 = vpop.eup %2139 }
 0x5a9   : > { %v934_v31 = vmul.f32 %v2140_v29, %v2136_v21 }
 0x5ab   : > { %v935_v34 = vpack.c.bf16 %v934_v31, %v932_v30 }
 0x5ad   : > { %2017 = vmatmul.mubr.msk.bf16.vlgmr.msra.gmra.mxu0 %vm605_vm2, %v935_v34 }
 0x5ae   : > { %2021 = vmatpush3.bf16.xpose.msra.mxu0 %v1038_v33  ;;  %2024 = vmatprep.mubr.msk.bf16.mxu0 %vm2202_vm3, %v2201_v9 }
 0x5af   : > { %2022 = vmatprep.subr.bf16.mxu0 %v2201_v9 }
 0x5b6   : > { %2023 = vmatpush3.bf16.xpose.msra.mxu0 %v1035_v36 }
 0x5b7   : > { %2044 = vmatprep.subr.bf16.mxu0 %v2201_v9 }
 0x5bd   : > { %2025 = vmatmul.mubr.msk.bf16.vlgmr.msra.gmra.mxu0 %vm706_vm1, %v1016_v37 }
 0x5be   : > { %2048 = vmatprep.mubr.msk.bf16.mxu0 %vm2202_vm3, %v2201_v9 }
 0x66d   : > { %v2433_v38 = vpop.f32.mrf.mxu0 }
 0x66f   : > { %v2018_v39 = vpop.f32.mrf.mxu0 }
 0x671   : > { %v2435_v40 = vpop.f32.mrf.mxu0 }
 0x673   : > { %v2019_v41 = vpop.f32.mrf.mxu0 }
 0x67d   : > { %v1074_v42 = vpop.f32.mrf.mxu0 }
 0x67e   : > { %v1081_v43 = vsel %vm605_vm2, %v1074_v42, -inf }
 0x67f   : > { %1082 = vmax.xlane.f32.xlu0 %v1081_v43  ;;  %v2026_v44 = vpop.f32.mrf.mxu0 }
 0x681   : > { %v1077_v45 = vpop.f32.mrf.mxu0 }
 0x682   : > { %v1084_v46 = vsel %vm605_vm2, %v1077_v45, -inf }
 0x683   : > { %1085 = vmax.xlane.f32.xlu1 %v1084_v46  ;;  %v2027_v47 = vpop.f32.mrf.mxu0 }
 0x694   : > { %1114 = vrot.lane.b32.xlu1 %v2120_v48, %s2204_s20 }
 0x698   : > { %1197 = vrot.lane.b32.xlu1 %v2121_v49, %s2205_s16 }
 0x69c   : > { %1195 = vrot.lane.b32.xlu1 %v2122_v50, %s2205_s16 }
 0x708   : > { %v1083_v51 = vpop.xlane.xlu0 %1082 }
 0x709   : > { %v1087_v52 = vsub.f32 %v1074_v42, %v1083_v51  ;;  %v1348_v51 = vld [vmem:[%s2689_s7 + $0x18] sm:$0xff] }
 0x70b   : > { %v1089_v53 = vmul.f32 1.442695, %v1087_v52  ;;  %v1347_v52 = vld [vmem:[%s2689_s7 + $0x10] sm:$0xff] }
 0x70c   : > { %v1086_v54 = vpop.xlane.xlu1 %1085 }
 0x70d   : > { %2141 = vpow2.f32 %v1089_v53  ;;  %v1088_v55 = vsub.f32 %v1077_v45, %v1086_v54  ;;  %v1346_v53 = vld [vmem:[%s2689_s7 + $0x8] sm:$0xff]  ;;  %v1345_v54 = vld [vmem:[%s2689_s7] sm:$0xff] }
 0x70f   : > { %v1091_v56 = vmul.f32 1.442695, %v1088_v55 }
 0x710   : > { %v1115_v1 = vpop.permute.xlu1 %1114 }
 0x711   : > { %2143 = vpow2.f32 %v1091_v56 }
 0x714   : > { %v1198_v4 = vpop.permute.xlu1 %1197 }
 0x715   : > { %v1206_v7 = vsel %vm706_vm1, %v1198_v4, 0 }
 0x718   : > { %v1196_v8 = vpop.permute.xlu1 %1195 }
 0x719   : > { %v1203_v10 = vsel %vm706_vm1, %v1196_v8, 0 }
 0x71a   : > { %v2142_v57 = vpop.eup %2141 }
 0x71b   : > { %v1093_v58 = vsel %vm605_vm2, %v2142_v57, 0.0 }
 0x71c   : > { %1094 = vadd.xlane.f32.xlu0 %v1093_v58 }
 0x71e   : > { %v2144_v59 = vpop.eup %2143 }
 0x71f   : > { %v1096_v60 = vsel %vm605_vm2, %v2144_v59, 0.0 }
 0x720   : > { %1097 = vadd.xlane.f32.xlu0 %v1096_v60 }
 0x736   : > { %1116 = vrot.lane.b32.xlu0 %v2119_v61, %s2204_s20 }
 0x73a   : > { %1183 = vrot.lane.b32.xlu0 %v2359_v25, %s2205_s16 }
 0x7a5   : > { %v1095_v62 = vpop.xlane.xlu0 %1094 }
 0x7a6   : > { %2145 = vrcp.f32 %v1095_v62 }
 0x7a9   : > { %v1098_v63 = vpop.xlane.xlu0 %1097 }
 0x7aa   : > { %2147 = vrcp.f32 %v1098_v63  ;;  %v1899_v63 = vld [vmem:[%s2690_s8] ss:$0 sm:$0xff] }
 0x7ad   : > { %v1117_v0 = vpop.permute.xlu0 %1116 }
 0x7ae   : > { %2029 = vmatpush3.bf16.msra.mxu1 %v1117_v0 }
 0x7af   : > { %2030 = vmatprep.subr.bf16.mxu1 %v2201_v9 }
 0x7b1   : > { %v1184_v11 = vpop.permute.xlu0 %1183 }
 0x7b2   : > { %2031 = vmatpush3.bf16.msra.mxu1 %v1115_v1 }
 0x7b3   : > { %2036 = vmatprep.subr.bf16.mxu1 %v2201_v9  ;;  %v2146_v2 = vpop.eup %2145 }
 0x7b4   : > { %v1100_v5 = vmul.f32 %v2146_v2, %v2142_v57 }
 0x7b7   : > { %v2148_v3 = vpop.eup %2147 }
 0x7b8   : > { %v1102_v6 = vmul.f32 %v2148_v3, %v2144_v59 }
 0x7ba   : > { %v1103_v25 = vpack.c.bf16 %v1102_v6, %v1100_v5 }
 0x7bc   : > { %2033 = vmatmul.mubr.msk.bf16.vlgmr.msra.gmra.mxu1 %vm605_vm2, %v1103_v25 }
 0x7bd   : > { %2037 = vmatpush3.bf16.xpose.msra.mxu1 %v1206_v7  ;;  %2040 = vmatprep.mubr.msk.bf16.mxu1 %vm2202_vm3, %v2201_v9 }
 0x7be   : > { %2038 = vmatprep.subr.bf16.mxu1 %v2201_v9 }
 0x7c5   : > { %2039 = vmatpush3.bf16.xpose.msra.mxu1 %v1203_v10 }
 0x7c6   : > { %2063 = vmatprep.subr.mxu1 %v1489_v15 }
 0x7cc   : > { %2041 = vmatmul.mubr.msk.bf16.vlgmr.msra.gmra.mxu1 %vm706_vm1, %v1184_v11 }
 0x7cd   : > { %2064 = vmatpush3.msra.mxu1 %v1489_v15 }
 0x87c   : > { %v1157_v12 = vpop.f32.mrf.mxu1 }
 0x87e   : > { %v2034_v14 = vpop.f32.mrf.mxu1 }
 0x880   : > { %v1160_v18 = vpop.f32.mrf.mxu1 }
 0x882   : > { %v2035_v19 = vpop.f32.mrf.mxu1 }
 0x88c   : > { %v1242_v20 = vpop.f32.mrf.mxu1 }
 0x88d   : > { %v1249_v21 = vsel %vm605_vm2, %v1242_v20, -inf }
 0x88e   : > { %1250 = vmax.xlane.f32.xlu1 %v1249_v21  ;;  %v2042_v22 = vpop.f32.mrf.mxu1  ;;  %v1486_v21 = vld [vmem:[%s2693_s11] sm:$0xff] }
 0x88f   : > { %v1587_v22 = vld [vmem:[%s2695_s13 + $0x38] sm:$0xff] }
 0x890   : > { %v1245_v23 = vpop.f32.mrf.mxu1 }
 0x891   : > { %v1252_v24 = vsel %vm605_vm2, %v1245_v23, -inf }
 0x892   : > { %1253 = vmax.xlane.f32.xlu0 %v1252_v24  ;;  %v2043_v26 = vpop.f32.mrf.mxu1  ;;  %v1585_v24 = vld [vmem:[%s2695_s13 + $0x28] sm:$0xff] }
 0x893   : > { %v1584_v26 = vld [vmem:[%s2695_s13 + $0x20] sm:$0xff] }
 0x89f   : > { %1284 = vrot.lane.b32.xlu1 %v2123_v27, %s2205_s16 }
 0x8a3   : > { %998 = vrot.lane.b32.xlu1 %v2433_v38, %s2206_s27 }
 0x8a7   : > { %1000 = vrot.lane.b32.xlu1 %v2435_v40, %s2206_s27  ;;  %s2208_s27 = smov 24  }
 0x8ab   : > { %1166 = vrot.lane.b32.xlu1 %v1157_v12, %s2207_s21 }
 0x917   : > { %v1251_v28 = vpop.xlane.xlu1 %1250 }
 0x918   : > { %v1255_v29 = vsub.f32 %v1242_v20, %v1251_v28  ;;  %v1487_v20 = vld [vmem:[%s2693_s11 + $0x8] sm:$0xff] }
 0x91a   : > { %v1257_v30 = vmul.f32 1.442695, %v1255_v29 }
 0x91b   : > { %v1285_v31 = vpop.permute.xlu1 %1284  ;;  %v1254_v32 = vpop.xlane.xlu0 %1253 }
 0x91c   : > { %2149 = vpow2.f32 %v1257_v30  ;;  %v1256_v33 = vsub.f32 %v1245_v23, %v1254_v32  ;;  %2045 = vmatpush3.bf16.msra.mxu0 %v1285_v31  ;;  %v1586_v23 = vld [vmem:[%s2695_s13 + $0x30] sm:$0xff] }
 0x91d   : > { %2046 = vmatprep.subr.bf16.mxu0 %v2201_v9  ;;  %v2124_v9 = vld [vmem:[%s2688_s6] sm:$0xff]  }
 0x91e   : > { %v1259_v34 = vmul.f32 1.442695, %v1256_v33 }
 0x91f   : > { %v999_v35 = vpop.permute.xlu1 %998 }
 0x920   : > { %2151 = vpow2.f32 %v1259_v34  ;;  %1005 = vst.msk [vmem:[#allocation2] sm:$0xff] %vm1004_vm4, %v999_v35  ;;  %v1902_v34 = vld [vmem:[%s2691_s9] ss:$0 sm:$0xff] }
 0x923   : > { %v1001_v36 = vpop.permute.xlu1 %1000 }
 0x924   : > { %1006 = vst.msk [vmem:[#allocation2 + $0x8] sm:$0xff] %vm1004_vm4, %v1001_v36  ;;  %v1903_v36 = vld [vmem:[%s2692_s10] ss:$0 sm:$0xff] }
 0x927   : > { %v1167_v37 = vpop.permute.xlu1 %1166 }
 0x928   : > { %1173 = vst.msk [vmem:[#allocation2] sm:$0xff] %vm1172_vm5, %v1167_v37 }
 0x929   : > { %v2150_v38 = vpop.eup %2149 }
 0x92a   : > { %v1261_v39 = vsel %vm605_vm2, %v2150_v38, 0.0 }
 0x92b   : > { %1262 = vadd.xlane.f32.xlu0 %v1261_v39 }
 0x92d   : > { %v2152_v40 = vpop.eup %2151 }
 0x92e   : > { %v1264_v41 = vsel %vm605_vm2, %v2152_v40, 0.0 }
 0x92f   : > { %1265 = vadd.xlane.f32.xlu0 %v1264_v41 }
 0x945   : > { %1282 = vrot.lane.b32.xlu0 %v2124_v9, %s2205_s16 }
 0x949   : > { %1168 = vrot.lane.b32.xlu0 %v1160_v18, %s2207_s21  ;;  %s496_s21 = scalar_lea.vmem %s2697_s15, %s1866_s25 }
 0x9b4   : > { %v1263_v42 = vpop.xlane.xlu0 %1262 }
 0x9b5   : > { %2153 = vrcp.f32 %v1263_v42 }
 0x9b8   : > { %v1266_v43 = vpop.xlane.xlu0 %1265 }
 0x9b9   : > { %2155 = vrcp.f32 %v1266_v43 }
 0x9bc   : > { %v1283_v44 = vpop.permute.xlu0 %1282 }
 0x9bd   : > { %2047 = vmatpush3.bf16.msra.mxu0 %v1283_v44  ;;  %v1583_v44 = vld [vmem:[%s2695_s13 + $0x18] sm:$0xff] }
 0x9be   : > { %2052 = vmatprep.subr.mxu0 %v1348_v51 }
 0x9c0   : > { %v1169_v45 = vpop.permute.xlu0 %1168 }
 0x9c1   : > { %1174 = vst.msk [vmem:[#allocation2 + $0x8] sm:$0xff] %vm1172_vm5, %v1169_v45  ;;  %v1582_v45 = vld [vmem:[%s2695_s13 + $0x10] sm:$0xff] }
 0x9c2   : > { %v2154_v46 = vpop.eup %2153 }
 0x9c3   : > { %v1268_v48 = vmul.f32 %v2154_v46, %v2150_v38  ;;  %v1581_v46 = vld [vmem:[%s2695_s13 + $0x8] sm:$0xff] }
 0x9c6   : > { %v2156_v47 = vpop.eup %2155 }
 0x9c7   : > { %v1270_v49 = vmul.f32 %v2156_v47, %v2152_v40  ;;  %v1580_v47 = vld [vmem:[%s2695_s13] sm:$0xff] }
 0x9c9   : > { %v1271_v50 = vpack.c.bf16 %v1270_v49, %v1268_v48  ;;  %v1904_v48 = vld [vmem:[%s2694_s12] ss:$0 sm:$0xff] }
 0x9cb   : > { %2049 = vmatmul.mubr.msk.bf16.vlgmr.msra.gmra.mxu0 %vm605_vm2, %v1271_v50 }
 0x9cc   : > { %2053 = vmatpush3.msra.mxu0 %v1348_v51 }
 0x9cd   : > { %2054 = vmatprep.subr.mxu0 %v1347_v52 }
 0x9ce   : > { %2055 = vmatpush3.msra.mxu0 %v1347_v52 }
 0x9cf   : > { %2056 = vmatprep.subr.mxu0 %v1346_v53 }
 0x9d0   : > { %2057 = vmatpush3.msra.mxu0 %v1346_v53 }
 0x9d1   : > { %2058 = vmatprep.subr.mxu0 %v1345_v54 }
 0x9d2   : > { %2059 = vmatpush3.msra.mxu0 %v1345_v54 }
 0x9d3   : > { %2074 = vmatprep.subr.mxu0 %v1587_v22 }
 0xa8b   : > { %v1325_v55 = vpop.f32.mrf.mxu0 }
 0xa8c   : > { %1334 = vrot.lane.b32.xlu1 %v1325_v55, %s2208_s27  ;;  %v1677_v55 = vlaneseq }
 0xa8d   : > { %v2050_v56 = vpop.f32.mrf.mxu0 }
 0xa8e   : > { %v2558_v56 = vand.u32 127, %v1677_v55 }
 0xa8f   : > { %v1328_v57 = vpop.f32.mrf.mxu0 }
 0xa90   : > { %1336 = vrot.lane.b32.xlu0 %v1328_v57, %s2208_s27  ;;  %v1907_v57 = vld [vmem:[%s2696_s14] ss:$0 sm:$0xff]  ;;  %vm1728_vm8 = vcmp.ge.s32.totalorder %v2558_v56, 3  ;;  %vm1729_vm9 = vcmp.lt.s32.totalorder %v2558_v56, 7  ;;  %vm1692_vm10 = vcmp.lt.s32.totalorder %v2558_v56, 3  ;;  %vm1765_vm12 = vcmp.ge.s32.totalorder %v2558_v56, 7 }
 0xa91   : > { %v2051_v58 = vpop.f32.mrf.mxu0  ;;  %vm2568_vm11 = vmand %vm1728_vm8, %vm1729_vm9  ;;  %vm1766_vm13 = vcmp.lt.s32.totalorder %v2558_v56, 10 }
 0xa92   : > { %vm2587_vm14 = vmand %vm1765_vm12, %vm1766_vm13 }
 0xafe   : > { %v1335_v59 = vpop.permute.xlu1 %1334 }
 0xaff   : > { %1341 = vst.msk [vmem:[#allocation2] sm:$0xff] %vm1340_vm6, %v1335_v59 }
 0xb02   : > { %v1337_v60 = vpop.permute.xlu0 %1336 }
 0xb03   : > { %1342 = vst.msk [vmem:[#allocation2 + $0x8] sm:$0xff] %vm1340_vm6, %v1337_v60 }
 0xb06   : > { %v1343_v61 = vld [vmem:[#allocation2] sm:$0xff] }
 0xb07   : > { %2060 = vmatprep.mubr.msk.f32.mxu0 %vm605_vm2, %v1343_v61 }
 0xb0a   : > { %v1344_v62 = vld [vmem:[#allocation2 + $0x8] sm:$0xff] }
 0xb0b   : > { %2061 = vmatmul.mubr.msk.f32.vlgmr.msra.gmra.mxu0 %vm605_vm2, %v1344_v62 }
 0xb0c   : > { %2075 = vmatpush3.msra.mxu0 %v1587_v22 }
 0xb0d   : > { %2076 = vmatprep.subr.mxu0 %v1586_v23 }
 0xb0e   : > { %2077 = vmatpush3.msra.mxu0 %v1586_v23 }
 0xb0f   : > { %2078 = vmatprep.subr.mxu0 %v1585_v24 }
 0xb10   : > { %2079 = vmatpush3.msra.mxu0 %v1585_v24 }
 0xb11   : > { %2080 = vmatprep.subr.mxu0 %v1584_v26 }
 0xb12   : > { %2081 = vmatpush3.msra.mxu0 %v1584_v26 }
 0xb13   : > { %2082 = vmatprep.subr.mxu0 %v1583_v44 }
 0xb14   : > { %2083 = vmatpush3.msra.mxu0 %v1583_v44 }
 0xb15   : > { %2084 = vmatprep.subr.mxu0 %v1582_v45 }
 0xb16   : > { %2085 = vmatpush3.msra.mxu0 %v1582_v45 }
 0xb17   : > { %2086 = vmatprep.subr.mxu0 %v1581_v46 }
 0xb18   : > { %2087 = vmatpush3.msra.mxu0 %v1581_v46 }
 0xb19   : > { %2088 = vmatprep.subr.mxu0 %v1580_v47 }
 0xb1a   : > { %2089 = vmatpush3.msra.mxu0 %v1580_v47 }
 0xbcb   : > { %v2062_v0 = vpop.f32.mrf.mxu0 }
 0xbcc   : > { %v1434_v1 = vadd.f32 %v2062_v0, %v1899_v63 }
 0xbcd   : > { %v1428_v2 = vpop.f32.mrf.mxu0 }
 0xbce   : > { %v1429_v3 = vadd.f32 %v1899_v63, %v1428_v2  ;;  %v1438_v4 = vadd.f32 %v1434_v1, %v593_v17 }
 0xbd0   : > { %v1442_v5 = vsel %vm605_vm2, %v1438_v4, 0.0  ;;  %v1437_v6 = vadd.f32 %v1429_v3, %v592_v16  ;;  %v1488_v16 = vld [vmem:[%s2693_s11 + $0x10] sm:$0xff] }
 0xbd1   : > { %1443 = vadd.xlane.f32.xlu0 %v1442_v5  ;;  %2065 = vmatprep.subr.mxu1 %v1488_v16 }
 0xbd2   : > { %v1439_v7 = vsel %vm605_vm2, %v1437_v6, 0.0  ;;  %2066 = vmatpush3.msra.mxu1 %v1488_v16 }
 0xbd3   : > { %1440 = vadd.xlane.f32.xlu1 %v1439_v7  ;;  %2067 = vmatprep.subr.mxu1 %v1487_v20 }
 0xbd4   : > { %2068 = vmatpush3.msra.mxu1 %v1487_v20 }
 0xbd5   : > { %2069 = vmatprep.subr.mxu1 %v1486_v21 }
 0xbd6   : > { %2070 = vmatpush3.msra.mxu1 %v1486_v21 }
 0xc5a   : > { %v1444_v25 = vpop.xlane.xlu0 %1443 }
 0xc5b   : > { %v1447_v8 = vmul.f32 0.03125, %v1444_v25 }
 0xc5c   : > { %v1441_v10 = vpop.xlane.xlu1 %1440 }
 0xc5d   : > { %v1446_v11 = vmul.f32 0.03125, %v1441_v10  ;;  %v1449_v12 = vsub.f32 %v1438_v4, %v1447_v8 }
 0xc5f   : > { %v1448_v14 = vsub.f32 %v1437_v6, %v1446_v11  ;;  %v1451_v13 = vmul.f32 %v1449_v12, %v1449_v12 }
 0xc61   : > { %v1450_v18 = vmul.f32 %v1448_v14, %v1448_v14  ;;  %v1455_v17 = vsel %vm605_vm2, %v1451_v13, 0.0 }
 0xc63   : > { %v1452_v19 = vsel %vm605_vm2, %v1450_v18, 0.0 }
 0xc64   : > { %1453 = vadd.xlane.f32.xlu0 %v1452_v19 }
 0xc68   : > { %1456 = vadd.xlane.f32.xlu0 %v1455_v17 }
 0xced   : > { %v1454_v27 = vpop.xlane.xlu0 %1453 }
 0xcee   : > { %v1458_v28 = vmul.f32 0.03125, %v1454_v27 }
 0xcf0   : > { %v1460_v29 = vadd.f32 1e-05, %v1458_v28 }
 0xcf1   : > { %v1457_v30 = vpop.xlane.xlu0 %1456 }
 0xcf2   : > { %2157 = vrsqrt.f32 %v1460_v29  ;;  %v1459_v31 = vmul.f32 0.03125, %v1457_v30 }
 0xcf4   : > { %v1461_v32 = vadd.f32 1e-05, %v1459_v31 }
 0xcf6   : > { %2159 = vrsqrt.f32 %v1461_v32 }
 0xcff   : > { %v2158_v33 = vpop.eup %2157 }
 0xd00   : > { %v1464_v35 = vmul.f32 %v2158_v33, %v1448_v14 }
 0xd02   : > { %v1473_v37 = vmul.f32 %v1902_v34, %v1464_v35 }
 0xd03   : > { %v2160_v38 = vpop.eup %2159 }
 0xd04   : > { %v1465_v39 = vmul.f32 %v2160_v38, %v1449_v12  ;;  %v1482_v40 = vadd.f32 %v1903_v36, %v1473_v37 }
 0xd06   : > { %v1474_v41 = vmul.f32 %v1902_v34, %v1465_v39  ;;  %v1484_v9 = vmax.f32 %v1482_v40, 0.0 }
 0xd08   : > { %v1483_v42 = vadd.f32 %v1903_v36, %v1474_v41  ;;  %2071 = vmatprep.mubr.msk.f32.mxu1 %vm605_vm2, %v1484_v9 }
 0xd0a   : > { %v1485_v43 = vmax.f32 %v1483_v42, 0.0 }
 0xd0c   : > { %2072 = vmatmul.mubr.msk.f32.vlgmr.msra.gmra.mxu1 %vm605_vm2, %v1485_v43 }
 0xdcc   : > { %v2073_v49 = vpop.f32.mrf.mxu1 }
 0xdcd   : > { %v1575_v50 = vadd.f32 %v2073_v49, %v1904_v48 }
 0xdce   : > { %v1569_v51 = vpop.f32.mrf.mxu1 }
 0xdcf   : > { %v1570_v52 = vadd.f32 %v1904_v48, %v1569_v51  ;;  %v1579_v54 = vmax.f32 %v1575_v50, 0.0 }
 0xdd1   : > { %v1578_v53 = vmax.f32 %v1570_v52, 0.0 }
 0xdd3   : > { %2090 = vmatprep.mubr.msk.f32.mxu0 %vm1595_vm7, %v1578_v53 }
 0xdd4   : > { %2091 = vmatmul.mubr.msk.f32.vlgmr.msra.gmra.mxu0 %vm1595_vm7, %v1579_v54 }
 0xe94   : > { %v2092_v58 = vpop.f32.mrf.mxu0 }
 0xe95   : > { %v2566_v59 = vadd.f32 %v2092_v58, %v1907_v57 }
 0xe96   : > { %v1668_v60 = vpop.f32.mrf.mxu0 }
 0xe97   : > { %v2572_v62 = vadd.f32 %v1907_v57, %v1668_v60  ;;  %v1695_v63 = vsel %vm1692_vm10, %v2566_v59, -1e+30  ;;  %v1732_v2 = vsel %vm2568_vm11, %v2566_v59, -1e+30  ;;  %v1769_v7 = vsel %vm2587_vm14, %v2566_v59, -1e+30 }
 0xe98   : > { %v1699_v0 = vsel %vm510_vm0, %v1695_v63, -inf  ;;  %v1736_v6 = vsel %vm510_vm0, %v1732_v2, -inf  ;;  %v1773_v10 = vsel %vm510_vm0, %v1769_v7, -inf  ;;  %v1911_v55 = vmul.f32 -1.442695, %v2566_v59 }
 0xe99   : > { %1700 = vmax.xlane.f32.xlu0 %v1699_v0  ;;  %v1694_v1 = vsel %vm1692_vm10, %v2572_v62, -1e+30  ;;  %v1731_v5 = vsel %vm2568_vm11, %v2572_v62, -1e+30  ;;  %v1768_v8 = vsel %vm2587_vm14, %v2572_v62, -1e+30 }
 0xe9a   : > { %v1696_v3 = vsel %vm510_vm0, %v1694_v1, -inf  ;;  %v1733_v25 = vsel %vm510_vm0, %v1731_v5, -inf  ;;  %v1770_v11 = vsel %vm510_vm0, %v1768_v8, -inf  ;;  %v1910_v54 = vmul.f32 -1.442695, %v2572_v62 }
 0xe9b   : > { %1697 = vmax.xlane.f32.xlu1 %v1696_v3 }
 0xe9d   : > { %1737 = vmax.xlane.f32.xlu0 %v1736_v6 }
 0xe9f   : > { %1734 = vmax.xlane.f32.xlu1 %v1733_v25 }
 0xea1   : > { %1774 = vmax.xlane.f32.xlu0 %v1773_v10 }
 0xea3   : > { %1771 = vmax.xlane.f32.xlu1 %v1770_v11 }
 0xf22   : > { %v2604_v12 = vpop.xlane.xlu0 %1700 }
 0xf23   : > { %v1703_v14 = vsub.f32 %v2566_v59, %v2604_v12 }
 0xf24   : > { %v2608_v18 = vpop.xlane.xlu1 %1697 }
 0xf25   : > { %v1705_v19 = vmin.f32 %v1703_v14, 0.0  ;;  %v1702_v13 = vsub.f32 %v2572_v62, %v2608_v18 }
 0xf26   : > { %v2612_v17 = vpop.xlane.xlu0 %1737 }
 0xf27   : > { %v1708_v15 = vmul.f32 1.442695, %v1705_v19  ;;  %v1704_v16 = vmin.f32 %v1702_v13, 0.0  ;;  %v1740_v20 = vsub.f32 %v2566_v59, %v2612_v17 }
 0xf28   : > { %v2616_v21 = vpop.xlane.xlu1 %1734 }
 0xf29   : > { %2161 = vpow2.f32 %v1708_v15  ;;  %v1706_v22 = vmul.f32 1.442695, %v1704_v16  ;;  %v1742_v23 = vmin.f32 %v1740_v20, 0.0  ;;  %v1739_v24 = vsub.f32 %v2572_v62, %v2616_v21 }
 0xf2a   : > { %v2620_v26 = vpop.xlane.xlu0 %1774 }
 0xf2b   : > { %2163 = vpow2.f32 %v1706_v22  ;;  %v1745_v27 = vmul.f32 1.442695, %v1742_v23  ;;  %v1741_v28 = vmin.f32 %v1739_v24, 0.0  ;;  %v1777_v29 = vsub.f32 %v2566_v59, %v2620_v26 }
 0xf2c   : > { %v2624_v30 = vpop.xlane.xlu1 %1771 }
 0xf2d   : > { %2165 = vpow2.f32 %v1745_v27  ;;  %v1743_v31 = vmul.f32 1.442695, %v1741_v28  ;;  %v1779_v32 = vmin.f32 %v1777_v29, 0.0  ;;  %v1776_v33 = vsub.f32 %v2572_v62, %v2624_v30 }
 0xf2f   : > { %2167 = vpow2.f32 %v1743_v31  ;;  %v1782_v34 = vmul.f32 1.442695, %v1779_v32  ;;  %v1778_v35 = vmin.f32 %v1776_v33, 0.0 }
 0xf31   : > { %2169 = vpow2.f32 %v1782_v34  ;;  %v1780_v36 = vmul.f32 1.442695, %v1778_v35 }
 0xf33   : > { %2171 = vpow2.f32 %v1780_v36 }
 0xf34   : > { %2173 = vpow2.f32 %v1910_v54 }
 0xf35   : > { %2175 = vpow2.f32 %v1911_v55 }
 0xf36   : > { %v2162_v37 = vpop.eup %2161 }
 0xf37   : > { %v1711_v38 = vsel %vm1692_vm10, %v2162_v37, 0.0 }
 0xf38   : > { %v2164_v39 = vpop.eup %2163  ;;  %v1715_v40 = vsel %vm510_vm0, %v1711_v38, 0.0 }
 0xf39   : > { %1716 = vadd.xlane.f32.xlu0 %v1715_v40  ;;  %v1710_v41 = vsel %vm1692_vm10, %v2164_v39, 0.0 }
 0xf3a   : > { %v2166_v9 = vpop.eup %2165  ;;  %v1712_v42 = vsel %vm510_vm0, %v1710_v41, 0.0 }
 0xf3b   : > { %1713 = vadd.xlane.f32.xlu1 %v1712_v42  ;;  %v1748_v43 = vsel %vm2568_vm11, %v2166_v9, 0.0 }
 0xf3c   : > { %v2168_v44 = vpop.eup %2167  ;;  %v1752_v45 = vsel %vm510_vm0, %v1748_v43, 0.0 }
 0xf3d   : > { %1753 = vadd.xlane.f32.xlu0 %v1752_v45  ;;  %v1747_v46 = vsel %vm2568_vm11, %v2168_v44, 0.0 }
 0xf3e   : > { %v2170_v47 = vpop.eup %2169  ;;  %v1749_v48 = vsel %vm510_vm0, %v1747_v46, 0.0 }
 0xf3f   : > { %1750 = vadd.xlane.f32.xlu1 %v1749_v48  ;;  %v1785_v49 = vsel %vm2587_vm14, %v2170_v47, 0.0 }
 0xf40   : > { %v2172_v50 = vpop.eup %2171  ;;  %v1789_v51 = vsel %vm510_vm0, %v1785_v49, 0.0 }
 0xf41   : > { %1790 = vadd.xlane.f32.xlu0 %v1789_v51  ;;  %v1784_v52 = vsel %vm2587_vm14, %v2172_v50, 0.0  ;;  %v2174_v0 = vpop.eup %2173 }
 0xf42   : > { %v1786_v53 = vsel %vm510_vm0, %v1784_v52, 0.0  ;;  %v2176_v2 = vpop.eup %2175  ;;  %v1685_v5 = vadd.f32 1.0, %v2174_v0 }
 0xf43   : > { %1787 = vadd.xlane.f32.xlu1 %v1786_v53  ;;  %v1686_v6 = vadd.f32 1.0, %v2176_v2 }
 0xfc2   : > { %v1717_v57 = vpop.xlane.xlu0 %1716 }
 0xfc3   : > { %2177 = vlog2.f32 %v1717_v57 }
 0xfc4   : > { %v1714_v58 = vpop.xlane.xlu1 %1713 }
 0xfc5   : > { %2179 = vlog2.f32 %v1714_v58 }
 0xfc6   : > { %v1754_v60 = vpop.xlane.xlu0 %1753 }
 0xfc7   : > { %2181 = vlog2.f32 %v1754_v60 }
 0xfc8   : > { %v1751_v63 = vpop.xlane.xlu1 %1750 }
 0xfc9   : > { %2183 = vlog2.f32 %v1751_v63 }
 0xfca   : > { %v1791_v1 = vpop.xlane.xlu0 %1790 }
 0xfcb   : > { %2185 = vlog2.f32 %v1791_v1 }
 0xfcc   : > { %v1788_v3 = vpop.xlane.xlu1 %1787 }
 0xfcd   : > { %2187 = vlog2.f32 %v1788_v3 }
 0xfce   : > { %2189 = vrcp.f32 %v1685_v5 }
 0xfcf   : > { %2191 = vrcp.f32 %v1686_v6 }
 0xfd0   : > { %v2178_v7 = vpop.eup %2177 }
 0xfd1   : > { %v1721_v11 = vmul.f32 0.6931472, %v2178_v7 }
 0xfd2   : > { %v2180_v25 = vpop.eup %2179 }
 0xfd3   : > { %v1719_v8 = vmul.f32 0.6931472, %v2180_v25  ;;  %v1723_v20 = vadd.f32 %v1721_v11, %v2604_v12 }
 0xfd4   : > { %v2182_v10 = vpop.eup %2181 }
 0xfd5   : > { %v1758_v14 = vmul.f32 0.6931472, %v2182_v10  ;;  %v1722_v13 = vadd.f32 %v1719_v8, %v2608_v18  ;;  %v1725_v32 = vsub.f32 %v2566_v59, %v1723_v20 }
 0xfd6   : > { %v2184_v19 = vpop.eup %2183 }
 0xfd7   : > { %v1756_v15 = vmul.f32 0.6931472, %v2184_v19  ;;  %v1760_v22 = vadd.f32 %v1758_v14, %v2612_v17  ;;  %v1724_v28 = vsub.f32 %v2572_v62, %v1722_v13 }
 0xfd8   : > { %v2186_v16 = vpop.eup %2185 }
 0xfd9   : > { %v1759_v23 = vadd.f32 %v1756_v15, %v2616_v21  ;;  %v1795_v24 = vmul.f32 0.6931472, %v2186_v16  ;;  %v1762_v33 = vsub.f32 %v2566_v59, %v1760_v22 }
 0xfda   : > { %v2188_v27 = vpop.eup %2187 }
 0xfdb   : > { %v1797_v29 = vadd.f32 %v1795_v24, %v2620_v26  ;;  %v1793_v31 = vmul.f32 0.6931472, %v2188_v27  ;;  %v1761_v18 = vsub.f32 %v2572_v62, %v1759_v23  ;;  %v2190_v12 = vpop.eup %2189 }
 0xfdc   : > { %v2192_v35 = vpop.eup %2191  ;;  %v1726_v21 = vsel %vm1692_vm10, %v1724_v28, %v2190_v12 }
 0xfdd   : > { %v1796_v34 = vadd.f32 %v1793_v31, %v2624_v30  ;;  %v1799_v17 = vsub.f32 %v2566_v59, %v1797_v29  ;;  %v1727_v36 = vsel %vm1692_vm10, %v1725_v32, %v2192_v35  ;;  %v1763_v30 = vsel %vm2568_vm11, %v1761_v18, %v1726_v21 }
 0xfde   : > { %v1764_v59 = vsel %vm2568_vm11, %v1762_v33, %v1727_v36 }
 0xfdf   : > { %v1798_v26 = vsub.f32 %v2572_v62, %v1796_v34  ;;  %v1801_v38 = vsel %vm2587_vm14, %v1799_v17, %v1764_v59 }
 0xfe0   : > { %1803 = vst.msk [vmem:[%s496_s21 + $0x8] sm:$0xff] %vm510_vm0, %v1801_v38 }
 0xfe1   : > { %v1800_v37 = vsel %vm2587_vm14, %v1798_v26, %v1763_v30 }
 0xfe2   : > { %1802 = vst.msk [vmem:[%s496_s21] sm:$0xff] %vm510_vm0, %v1800_v37 }
 0xfe3 PF: > { %s25_s18 = sadd.s32 1, %s2199_s18  }
 0xfe4   : > { %p22_p4 = scmp.ge.s32.totalorder %s25_s18, 4  }
 0xfe6   :  { %24 = sbr.rel (!%p22_p4) target bundleno = 1 (0x1), region = 110 }

</bundles_post_ra>
